<compile_context>
chip_gen: v5e
topology: v5e:2x2
jax: 0.10.0
libtpu: 0.0.40
codegen_flags: <defaults>
</compile_context>

<pallas_src>
import functools

import jax
import jax.numpy as jnp
from jax import lax
from jax.experimental import pallas as pl
from jax.experimental.pallas import tpu as pltpu


def encoder_stack_kernel(*refs, num_heads, has_attn_mask):
  if has_attn_mask:
    (src_ref, so_ref, am_ref,
     wf_ref, bf_ref, ow_ref, ob_ref, l1w_ref, l1b_ref, l2w_ref, l2b_ref,
     n1g_ref, n1b_ref, n2g_ref, n2b_ref, o_ref) = refs
  else:
    (src_ref, so_ref,
     wf_ref, bf_ref, ow_ref, ob_ref, l1w_ref, l1b_ref, l2w_ref, l2b_ref,
     n1g_ref, n1b_ref, n2g_ref, n2b_ref, o_ref) = refs
    am_ref = None

  f32, bf16 = jnp.float32, jnp.bfloat16
  Bt, T, D = src_ref.shape                       # (batch-per-step, tokens, model dim)
  H = num_heads
  hd = D // H
  L = wf_ref.shape[0]                            # num_layers (leading axis of every weight)
  M = Bt * T                                     # rows fed to every projection / FFN matmul

  # All Bt*T rows in one slab -> fills the MXU M dimension for the dense matmuls.
  x0 = src_ref[...].reshape(M, D).astype(f32)

  # 0/1 float mask -> boolean select mask; computed once, reused across layers/batch/heads.
  so_b = (so_ref[...] != 0.0)[None, :, :]        # (1, T, T) bool
  am = am_ref[...].astype(f32)[None, :, :] if has_attn_mask else None

  def layer_norm(v, g, b):
    mu = jnp.mean(v, axis=-1, keepdims=True)
    var = jnp.mean(jnp.square(v - mu), axis=-1, keepdims=True)
    return (v - mu) * lax.rsqrt(var + 1e-5) * g + b

  def one_layer(l, x):
    # Per-layer weights: dynamic leading-axis index into the resident (L, ...) VMEM slabs.
    wf = wf_ref[l]                               # (D, 5D) bf16, cols [q | q_s | k | k_s | v]
    bf = bf_ref[l]                               # (1, 5D) f32 (scaling folded into q / q_s)
    ow = ow_ref[l]                               # (H, hd, D) bf16 (out_proj, head-major rows)
    ob = ob_ref[l]                               # (1, D) f32
    l1w, l1b = l1w_ref[l], l1b_ref[l]            # (D, F) bf16, (1, F) f32
    l2w, l2b = l2w_ref[l], l2b_ref[l]            # (F, D) bf16, (1, D) f32
    g1, b1 = n1g_ref[l], n1b_ref[l]
    g2, b2 = n2g_ref[l], n2b_ref[l]

    # Fused input projection over all Bt*T rows (one bf16 MXU pass instead of two skinny ones).
    qkv = jnp.dot(x.astype(bf16), wf, preferred_element_type=f32) + bf     # (M, 5D) f32
    qkv3 = qkv.reshape(Bt, T, 5 * D)

    attn_rows = []
    for j in range(Bt):                          # static loop over batch elements in the block
      qkv_j = qkv3[j]                            # (T, 5D)
      qq = qkv_j[:, 0:2 * D]                     # (T, 2D)  [q heads | q_self heads]
      kk = qkv_j[:, 2 * D:4 * D]                 # (T, 2D)  [k heads | k_self heads]
      vv = qkv_j[:, 4 * D:5 * D]                 # (T, D)

      # Head-major stacks -> leading-batch-dim batched einsums (single MXU pass per einsum).
      q_h = jnp.stack([qq[:, g * hd:(g + 1) * hd] for g in range(2 * H)],
                      axis=0).astype(bf16)       # (2H, T, hd)
      k_h = jnp.stack([kk[:, g * hd:(g + 1) * hd] for g in range(2 * H)],
                      axis=0).astype(bf16)       # (2H, T, hd)
      v_h = jnp.stack([vv[:, h * hd:(h + 1) * hd] for h in range(H)],
                      axis=0).astype(bf16)       # (H, T, hd)

      s_all = jnp.einsum('gqd,gkd->gqk', q_h, k_h,
                         preferred_element_type=f32)                       # (2H, T, T)
      # groups 0..H-1 = q@k ("other" path), H..2H-1 = q_s@k_s ("self" path)
      scores = jnp.where(so_b, s_all[H:], s_all[:H])                       # (H, T, T)
      if has_attn_mask:
        scores = scores + am
      scores = scores - jnp.max(scores, axis=-1, keepdims=True)
      e = jnp.exp(scores)
      probs = e * pl.reciprocal(jnp.sum(e, axis=-1, keepdims=True), approx=True)
      heads = jnp.einsum('gqk,gkd->gqd', probs.astype(bf16), v_h,
                         preferred_element_type=f32)                       # (H, T, hd)
      # Output projection folded over the head axis (no VMEM scratch, lane-dense N=D).
      attn_j = jnp.sum(
          jnp.einsum('gqd,gdn->gqn', heads.astype(bf16), ow,
                     preferred_element_type=f32),
          axis=0)                                                          # (T, D)
      attn_rows.append(attn_j)

    attn = attn_rows[0] if Bt == 1 else jnp.concatenate(attn_rows, axis=0)  # (M, D)

    # residual + LayerNorm 1
    y = layer_norm(x + attn + ob, g1, b1)

    # feed-forward (dropout = identity in eval mode)
    ff = jnp.dot(y.astype(bf16), l1w, preferred_element_type=f32) + l1b
    ff = jnp.maximum(ff, 0.0)
    ff = jnp.dot(ff.astype(bf16), l2w, preferred_element_type=f32) + l2b

    # residual + LayerNorm 2
    return layer_norm(y + ff, g2, b2)

  x_out = lax.fori_loop(0, L, one_layer, x0)
  o_ref[...] = x_out.reshape(Bt, T, D).astype(o_ref.dtype)


def _pick_block_batch(B, T):
  """Batch elements per grid step.

  Prefer the smallest divisor of B giving >=128 MXU rows while keeping >= 2 grid steps
  (so both v7x TensorCores get work); otherwise just fill the M dimension (<= 512 rows).
  """
  divs = [d for d in range(1, B + 1) if B % d == 0]
  good = [d for d in divs if d * T >= 128 and B // d >= 2]
  if good:
    return min(good)
  ok = [d for d in divs if d * T <= 512]
  return max(ok) if ok else 1


def agentformer_encoder(src, src_self_other_mask, layer_params, num_heads,
                        src_mask=None, block_batch=None):
  """src: (T, B, D); src_self_other_mask: (T, T) 0/1; src_mask: optional (T, T) additive.

  layer_params: list (length num_layers) of per-layer parameter dicts in PyTorch Linear
  layout.  _get_clones makes them identical at init, but a trained AgentFormerEncoder has
  distinct per-layer weights, so the kernel takes (and indexes) a full per-layer stack.
  """
  T, B, D = src.shape
  H = num_heads
  hd = D // H
  scaling = 1.0 / (hd ** 0.5)
  f32, bf16 = jnp.float32, jnp.bfloat16
  num_layers = len(layer_params)

  def prep(p):
    in_w = p['in_w'].astype(f32)                 # (3D, D)
    in_b = p['in_b'].astype(f32)                 # (3D,)
    in_w_s = p['in_w_self'].astype(f32)          # (2D, D)
    in_b_s = p['in_b_self'].astype(f32)          # (2D,)
    # Fused projection rows ordered [q | q_s | k | k_s | v]; fold 1/sqrt(hd) into q / q_s.
    w_rows = jnp.concatenate(
        [in_w[0:D] * scaling, in_w_s[0:D] * scaling,
         in_w[D:2 * D], in_w_s[D:2 * D], in_w[2 * D:3 * D]], axis=0)          # (5D, D)
    b_f = jnp.concatenate(
        [in_b[0:D] * scaling, in_b_s[0:D] * scaling,
         in_b[D:2 * D], in_b_s[D:2 * D], in_b[2 * D:3 * D]], axis=0)[None, :]  # (1, 5D)
    return dict(
        wf=w_rows.T.astype(bf16),                                   # (D, 5D)
        bf=b_f,                                                     # (1, 5D) f32
        ow=p['out_w'].T.astype(bf16).reshape(H, hd, D),             # (H, hd, D)
        ob=p['out_b'].astype(f32)[None, :],
        l1w=p['lin1_w'].T.astype(bf16), l1b=p['lin1_b'].astype(f32)[None, :],
        l2w=p['lin2_w'].T.astype(bf16), l2b=p['lin2_b'].astype(f32)[None, :],
        n1g=p['n1_g'].astype(f32)[None, :], n1b=p['n1_b'].astype(f32)[None, :],
        n2g=p['n2_g'].astype(f32)[None, :], n2b=p['n2_b'].astype(f32)[None, :])

  prepped = [prep(p) for p in layer_params]
  order = ('wf', 'bf', 'ow', 'ob', 'l1w', 'l1b', 'l2w', 'l2b',
           'n1g', 'n1b', 'n2g', 'n2b')
  stacked = tuple(jnp.stack([pp[k] for pp in prepped], axis=0) for k in order)

  # TODO(synk): emit (B, T, D) activations upstream to skip this extra HBM pass.
  x_btd = jnp.transpose(src, (1, 0, 2))          # (B, T, D)
  so = src_self_other_mask.astype(f32)

  has_mask = src_mask is not None
  mask_args = (src_mask.astype(f32),) if has_mask else ()
  args = (x_btd, so) + mask_args + stacked

  bt = block_batch if block_batch is not None else _pick_block_batch(B, T)
  assert B % bt == 0, (B, bt)
  grid = (B // bt,)

  def resident(a):
    # Whole array, constant index_map -> stays resident in VMEM across grid steps.
    return pl.BlockSpec(a.shape, lambda b: (0,) * a.ndim)

  in_specs = [pl.BlockSpec((bt, T, D), lambda b: (b, 0, 0))]
  in_specs += [resident(a) for a in args[1:]]
  out_spec = pl.BlockSpec((bt, T, D), lambda b: (b, 0, 0))

  # Explicit VMEM budget: resident weights/masks (x2 headroom) + double-buffered I/O blocks
  # + slack for the in-kernel intermediates.  Capped at v7x's 64 MiB physical VMEM.
  def _nbytes(a):
    return int(a.size) * a.dtype.itemsize
  resident_bytes = sum(_nbytes(a) for a in args[1:])
  io_bytes = 2 * 2 * bt * T * D * (x_btd.dtype.itemsize + src.dtype.itemsize)
  vmem_limit = int(min(max(2 * resident_bytes + io_bytes + (8 << 20), 16 << 20), 64 << 20))

  kernel = functools.partial(encoder_stack_kernel, num_heads=H,
                             has_attn_mask=has_mask)

  out_btd = pl.pallas_call(
      kernel,
      out_shape=jax.ShapeDtypeStruct((B, T, D), src.dtype),
      grid=grid,
      in_specs=in_specs,
      out_specs=out_spec,
      compiler_params=pltpu.CompilerParams(
          dimension_semantics=("parallel",),
          vmem_limit_bytes=vmem_limit),
  )(*args)
  return jnp.transpose(out_btd, (1, 0, 2))


def init_layer_params(key, d_model, dim_feedforward):
  """Parameters in the original PyTorch Linear layout (out_features, in_features)."""
  ks = jax.random.split(key, 8)
  s = 0.05
  f32 = jnp.float32
  return dict(
      in_w=jax.random.normal(ks[0], (3 * d_model, d_model), f32) * s,
      in_b=jax.random.normal(ks[1], (3 * d_model,), f32) * s,
      in_w_self=jax.random.normal(ks[2], (2 * d_model, d_model), f32) * s,
      in_b_self=jax.random.normal(ks[3], (2 * d_model,), f32) * s,
      out_w=jax.random.normal(ks[4], (d_model, d_model), f32) * s,
      out_b=jnp.zeros((d_model,), f32),
      lin1_w=jax.random.normal(ks[5], (dim_feedforward, d_model), f32) * s,
      lin1_b=jax.random.normal(ks[6], (dim_feedforward,), f32) * s,
      lin2_w=jax.random.normal(ks[7], (d_model, dim_feedforward), f32) * s,
      lin2_b=jnp.zeros((d_model,), f32),
      n1_g=jnp.ones((d_model,), f32), n1_b=jnp.zeros((d_model,), f32),
      n2_g=jnp.ones((d_model,), f32), n2_b=jnp.zeros((d_model,), f32),
  )


def reference_encoder(src, so_mask, layer_params, num_heads, src_mask=None):
  """Pure-JAX f32 mirror of the PyTorch forward (eval mode), per-layer unfused weights."""
  T, B, D = src.shape
  hd = D // num_heads
  scaling = 1.0 / (hd ** 0.5)

  def layer_norm(x, g, b):
    mu = jnp.mean(x, axis=-1, keepdims=True)
    var = jnp.mean(jnp.square(x - mu), axis=-1, keepdims=True)
    return (x - mu) / jnp.sqrt(var + 1e-5) * g + b

  x = src
  for p in layer_params:
    outs = []
    for bi in range(B):
      xb = x[:, bi, :]
      qkv = xb @ p['in_w'].T + p['in_b']
      q = qkv[:, 0:D] * scaling
      k = qkv[:, D:2 * D]
      v = qkv[:, 2 * D:3 * D]
      qk_s = xb @ p['in_w_self'].T + p['in_b_self']
      q_s = qk_s[:, 0:D] * scaling
      k_s = qk_s[:, D:2 * D]
      heads = []
      for h in range(num_heads):
        sl = slice(h * hd, (h + 1) * hd)
        scores = (q[:, sl] @ k[:, sl].T) * (1.0 - so_mask) \
               + (q_s[:, sl] @ k_s[:, sl].T) * so_mask
        if src_mask is not None:
          scores = scores + src_mask
        probs = jax.nn.softmax(scores, axis=-1)
        heads.append(probs @ v[:, sl])
      attn = jnp.concatenate(heads, axis=-1) @ p['out_w'].T + p['out_b']
      y = layer_norm(xb + attn, p['n1_g'], p['n1_b'])
      ff = jnp.maximum(y @ p['lin1_w'].T + p['lin1_b'], 0.0)
      ff = ff @ p['lin2_w'].T + p['lin2_b']
      outs.append(layer_norm(y + ff, p['n2_g'], p['n2_b']))
    x = jnp.stack(outs, axis=1)
  return x


if __name__ == "__main__":
  # Small shapes: seq T=8, batch B=2, d_model=32, nhead=4, dim_feedforward=64, 2 layers.
  T, B, D, H, F = 8, 2, 32, 4, 64
  num_layers = 2

  key = jax.random.PRNGKey(0)
  k_src, k_l0, k_l1 = jax.random.split(key, 3)

  src = jax.random.normal(k_src, (T, B, D), jnp.float32)

  # Agent ids: tokens of the same agent attend through the "self" projection path.
  agent_ids = jnp.array([0, 0, 1, 1, 0, 0, 1, 1], jnp.int32)
  src_self_other_mask = (agent_ids[:, None] == agent_ids[None, :]).astype(jnp.float32)

  # Distinct per-layer params (like a trained checkpoint); _get_clones at init would simply
  # pass the same dict twice — both cases are handled by the stacked per-layer weights.
  layer_params = [init_layer_params(k_l0, D, F), init_layer_params(k_l1, D, F)]

  # src_mask=None matches the reference forward's default (mask input skipped entirely).
  out = agentformer_encoder(src, src_self_other_mask, layer_params, H, src_mask=None)
  jax.block_until_ready(out)
  assert out.shape == (T, B, D), out.shape

  ref = reference_encoder(src, src_self_other_mask, layer_params, H, src_mask=None)
  err = float(jnp.max(jnp.abs(out - ref)))
  # Loose tolerance: bf16 MXU operands + approx EUP reciprocal vs the pure-f32 reference.
  assert err < 5e-2, f"max abs error vs reference = {err}"
  print("KERNEL_OK")
</pallas_src>

<mosaic_0001>
module attributes {stable_mosaic.version = 11 : i64} {
  func.func @encoder_stack_kernel(%arg0: i32, %arg1: memref<2x8x32xf32, #tpu.memory_space<vmem>>, %arg2: memref<8x8xf32, #tpu.memory_space<vmem>>, %arg3: memref<2x32x160xbf16, #tpu.memory_space<vmem>>, %arg4: memref<2x1x160xf32, #tpu.memory_space<vmem>>, %arg5: memref<2x4x8x32xbf16, #tpu.memory_space<vmem>>, %arg6: memref<2x1x32xf32, #tpu.memory_space<vmem>>, %arg7: memref<2x32x64xbf16, #tpu.memory_space<vmem>>, %arg8: memref<2x1x64xf32, #tpu.memory_space<vmem>>, %arg9: memref<2x64x32xbf16, #tpu.memory_space<vmem>>, %arg10: memref<2x1x32xf32, #tpu.memory_space<vmem>>, %arg11: memref<2x1x32xf32, #tpu.memory_space<vmem>>, %arg12: memref<2x1x32xf32, #tpu.memory_space<vmem>>, %arg13: memref<2x1x32xf32, #tpu.memory_space<vmem>>, %arg14: memref<2x1x32xf32, #tpu.memory_space<vmem>>, %arg15: memref<2x8x32xf32, #tpu.memory_space<vmem>>) attributes {dimension_semantics = [#tpu.dimension_semantics<parallel>], iteration_bounds = array<i64: 1>, scalar_prefetch = 0 : i64, scratch_operands = 0 : i64, tpu.core_type = #tpu.core_type<tc>, window_params = [{transform_indices = @transform_0, window_bounds = array<i64: 2, 8, 32>}, {pipeline_mode = #tpu.pipeline_mode<synchronous>, transform_indices = @transform_1, window_bounds = array<i64: 8, 8>}, {pipeline_mode = #tpu.pipeline_mode<synchronous>, transform_indices = @transform_2, window_bounds = array<i64: 2, 32, 160>}, {pipeline_mode = #tpu.pipeline_mode<synchronous>, transform_indices = @transform_3, window_bounds = array<i64: 2, 1, 160>}, {pipeline_mode = #tpu.pipeline_mode<synchronous>, transform_indices = @transform_4, window_bounds = array<i64: 2, 4, 8, 32>}, {pipeline_mode = #tpu.pipeline_mode<synchronous>, transform_indices = @transform_5, window_bounds = array<i64: 2, 1, 32>}, {pipeline_mode = #tpu.pipeline_mode<synchronous>, transform_indices = @transform_6, window_bounds = array<i64: 2, 32, 64>}, {pipeline_mode = #tpu.pipeline_mode<synchronous>, transform_indices = @transform_7, window_bounds = array<i64: 2, 1, 64>}, {pipeline_mode = #tpu.pipeline_mode<synchronous>, transform_indices = @transform_8, window_bounds = array<i64: 2, 64, 32>}, {pipeline_mode = #tpu.pipeline_mode<synchronous>, transform_indices = @transform_9, window_bounds = array<i64: 2, 1, 32>}, {pipeline_mode = #tpu.pipeline_mode<synchronous>, transform_indices = @transform_10, window_bounds = array<i64: 2, 1, 32>}, {pipeline_mode = #tpu.pipeline_mode<synchronous>, transform_indices = @transform_11, window_bounds = array<i64: 2, 1, 32>}, {pipeline_mode = #tpu.pipeline_mode<synchronous>, transform_indices = @transform_12, window_bounds = array<i64: 2, 1, 32>}, {pipeline_mode = #tpu.pipeline_mode<synchronous>, transform_indices = @transform_13, window_bounds = array<i64: 2, 1, 32>}, {transform_indices = @transform_14, window_bounds = array<i64: 2, 8, 32>}]} {
    %c0 = arith.constant 0 : index
    %c0_0 = arith.constant 0 : index
    %c0_1 = arith.constant 0 : index
    %0 = vector.load %arg1[%c0, %c0_0, %c0_1] : memref<2x8x32xf32, #tpu.memory_space<vmem>>, vector<2x8x32xf32>
    %1 = vector.shape_cast %0 : vector<2x8x32xf32> to vector<16x32xf32>
    %c0_2 = arith.constant 0 : index
    %c0_3 = arith.constant 0 : index
    %2 = vector.load %arg2[%c0_2, %c0_3] : memref<8x8xf32, #tpu.memory_space<vmem>>, vector<8x8xf32>
    %cst = arith.constant 0.000000e+00 : f32
    %3 = vector.broadcast %cst : f32 to vector<8x8xf32>
    %4 = arith.cmpf one, %2, %3 : vector<8x8xf32>
    %5 = vector.shape_cast %4 : vector<8x8xi1> to vector<1x8x8xi1>
    %c0_i32 = arith.constant 0 : i32
    %c2_i32 = arith.constant 2 : i32
    %6 = arith.addi %c0_i32, %c2_i32 : i32
    %c1_i32 = arith.constant 1 : i32
    %7 = scf.for %arg16 = %c0_i32 to %6 step %c1_i32 iter_args(%arg17 = %1) -> (vector<16x32xf32>)  : i32 {
      %10 = arith.index_cast %arg16 : i32 to index
      %c0_8 = arith.constant 0 : index
      %c0_9 = arith.constant 0 : index
      %11 = vector.load %arg3[%10, %c0_8, %c0_9] : memref<2x32x160xbf16, #tpu.memory_space<vmem>>, vector<1x32x160xbf16>
      %12 = vector.shape_cast %11 : vector<1x32x160xbf16> to vector<32x160xbf16>
      %13 = arith.index_cast %arg16 : i32 to index
      %c0_10 = arith.constant 0 : index
      %c0_11 = arith.constant 0 : index
      %14 = vector.load %arg4[%13, %c0_10, %c0_11] : memref<2x1x160xf32, #tpu.memory_space<vmem>>, vector<1x1x160xf32>
      %15 = vector.shape_cast %14 : vector<1x1x160xf32> to vector<1x160xf32>
      %16 = arith.index_cast %arg16 : i32 to index
      %c0_12 = arith.constant 0 : index
      %c0_13 = arith.constant 0 : index
      %c0_14 = arith.constant 0 : index
      %17 = vector.load %arg5[%16, %c0_12, %c0_13, %c0_14] : memref<2x4x8x32xbf16, #tpu.memory_space<vmem>>, vector<1x4x8x32xbf16>
      %18 = vector.shape_cast %17 : vector<1x4x8x32xbf16> to vector<4x8x32xbf16>
      %19 = arith.index_cast %arg16 : i32 to index
      %c0_15 = arith.constant 0 : index
      %c0_16 = arith.constant 0 : index
      %20 = vector.load %arg6[%19, %c0_15, %c0_16] : memref<2x1x32xf32, #tpu.memory_space<vmem>>, vector<1x1x32xf32>
      %21 = vector.shape_cast %20 : vector<1x1x32xf32> to vector<1x32xf32>
      %22 = arith.index_cast %arg16 : i32 to index
      %c0_17 = arith.constant 0 : index
      %c0_18 = arith.constant 0 : index
      %23 = vector.load %arg7[%22, %c0_17, %c0_18] : memref<2x32x64xbf16, #tpu.memory_space<vmem>>, vector<1x32x64xbf16>
      %24 = vector.shape_cast %23 : vector<1x32x64xbf16> to vector<32x64xbf16>
      %25 = arith.index_cast %arg16 : i32 to index
      %c0_19 = arith.constant 0 : index
      %c0_20 = arith.constant 0 : index
      %26 = vector.load %arg8[%25, %c0_19, %c0_20] : memref<2x1x64xf32, #tpu.memory_space<vmem>>, vector<1x1x64xf32>
      %27 = vector.shape_cast %26 : vector<1x1x64xf32> to vector<1x64xf32>
      %28 = arith.index_cast %arg16 : i32 to index
      %c0_21 = arith.constant 0 : index
      %c0_22 = arith.constant 0 : index
      %29 = vector.load %arg9[%28, %c0_21, %c0_22] : memref<2x64x32xbf16, #tpu.memory_space<vmem>>, vector<1x64x32xbf16>
      %30 = vector.shape_cast %29 : vector<1x64x32xbf16> to vector<64x32xbf16>
      %31 = arith.index_cast %arg16 : i32 to index
      %c0_23 = arith.constant 0 : index
      %c0_24 = arith.constant 0 : index
      %32 = vector.load %arg10[%31, %c0_23, %c0_24] : memref<2x1x32xf32, #tpu.memory_space<vmem>>, vector<1x1x32xf32>
      %33 = vector.shape_cast %32 : vector<1x1x32xf32> to vector<1x32xf32>
      %34 = arith.index_cast %arg16 : i32 to index
      %c0_25 = arith.constant 0 : index
      %c0_26 = arith.constant 0 : index
      %35 = vector.load %arg11[%34, %c0_25, %c0_26] : memref<2x1x32xf32, #tpu.memory_space<vmem>>, vector<1x1x32xf32>
      %36 = vector.shape_cast %35 : vector<1x1x32xf32> to vector<1x32xf32>
      %37 = arith.index_cast %arg16 : i32 to index
      %c0_27 = arith.constant 0 : index
      %c0_28 = arith.constant 0 : index
      %38 = vector.load %arg12[%37, %c0_27, %c0_28] : memref<2x1x32xf32, #tpu.memory_space<vmem>>, vector<1x1x32xf32>
      %39 = vector.shape_cast %38 : vector<1x1x32xf32> to vector<1x32xf32>
      %40 = arith.index_cast %arg16 : i32 to index
      %c0_29 = arith.constant 0 : index
      %c0_30 = arith.constant 0 : index
      %41 = vector.load %arg13[%40, %c0_29, %c0_30] : memref<2x1x32xf32, #tpu.memory_space<vmem>>, vector<1x1x32xf32>
      %42 = vector.shape_cast %41 : vector<1x1x32xf32> to vector<1x32xf32>
      %43 = arith.index_cast %arg16 : i32 to index
      %c0_31 = arith.constant 0 : index
      %c0_32 = arith.constant 0 : index
      %44 = vector.load %arg14[%43, %c0_31, %c0_32] : memref<2x1x32xf32, #tpu.memory_space<vmem>>, vector<1x1x32xf32>
      %45 = vector.shape_cast %44 : vector<1x1x32xf32> to vector<1x32xf32>
      %46 = arith.truncf %arg17 : vector<16x32xf32> to vector<16x32xbf16>
      %cst_33 = arith.constant dense<0.000000e+00> : vector<16x160xf32>
      %47 = tpu.matmul %46, %12, %cst_33 {dimension_numbers = #tpu.dot_dimension_numbers<[1], [0], [0], [1], [0, 0, 1, 1], [], []>} : vector<16x32xbf16>, vector<32x160xbf16>, vector<16x160xf32> -> vector<16x160xf32>
      %48 = vector.broadcast %15 : vector<1x160xf32> to vector<16x160xf32>
      %49 = arith.addf %47, %48 : vector<16x160xf32>
      %50 = vector.shape_cast %49 : vector<16x160xf32> to vector<2x8x160xf32>
      %51 = vector.extract_strided_slice %50 {offsets = [0, 0, 0], sizes = [1, 8, 160], strides = [1, 1, 1]} : vector<2x8x160xf32> to vector<1x8x160xf32>
      %52 = vector.shape_cast %51 : vector<1x8x160xf32> to vector<8x160xf32>
      %53 = vector.extract_strided_slice %52 {offsets = [0, 0], sizes = [8, 64], strides = [1, 1]} : vector<8x160xf32> to vector<8x64xf32>
      %54 = vector.extract_strided_slice %52 {offsets = [0, 64], sizes = [8, 64], strides = [1, 1]} : vector<8x160xf32> to vector<8x64xf32>
      %55 = vector.extract_strided_slice %52 {offsets = [0, 128], sizes = [8, 32], strides = [1, 1]} : vector<8x160xf32> to vector<8x32xf32>
      %56 = vector.extract_strided_slice %53 {offsets = [0, 0], sizes = [8, 8], strides = [1, 1]} : vector<8x64xf32> to vector<8x8xf32>
      %57 = vector.extract_strided_slice %53 {offsets = [0, 8], sizes = [8, 8], strides = [1, 1]} : vector<8x64xf32> to vector<8x8xf32>
      %58 = vector.extract_strided_slice %53 {offsets = [0, 16], sizes = [8, 8], strides = [1, 1]} : vector<8x64xf32> to vector<8x8xf32>
      %59 = vector.extract_strided_slice %53 {offsets = [0, 24], sizes = [8, 8], strides = [1, 1]} : vector<8x64xf32> to vector<8x8xf32>
      %60 = vector.extract_strided_slice %53 {offsets = [0, 32], sizes = [8, 8], strides = [1, 1]} : vector<8x64xf32> to vector<8x8xf32>
      %61 = vector.extract_strided_slice %53 {offsets = [0, 40], sizes = [8, 8], strides = [1, 1]} : vector<8x64xf32> to vector<8x8xf32>
      %62 = vector.extract_strided_slice %53 {offsets = [0, 48], sizes = [8, 8], strides = [1, 1]} : vector<8x64xf32> to vector<8x8xf32>
      %63 = vector.extract_strided_slice %53 {offsets = [0, 56], sizes = [8, 8], strides = [1, 1]} : vector<8x64xf32> to vector<8x8xf32>
      %64 = vector.shape_cast %56 : vector<8x8xf32> to vector<1x8x8xf32>
      %65 = vector.shape_cast %57 : vector<8x8xf32> to vector<1x8x8xf32>
      %66 = vector.shape_cast %58 : vector<8x8xf32> to vector<1x8x8xf32>
      %67 = vector.shape_cast %59 : vector<8x8xf32> to vector<1x8x8xf32>
      %68 = vector.shape_cast %60 : vector<8x8xf32> to vector<1x8x8xf32>
      %69 = vector.shape_cast %61 : vector<8x8xf32> to vector<1x8x8xf32>
      %70 = vector.shape_cast %62 : vector<8x8xf32> to vector<1x8x8xf32>
      %71 = vector.shape_cast %63 : vector<8x8xf32> to vector<1x8x8xf32>
      %72 = tpu.concatenate %64, %65, %66, %67, %68, %69, %70, %71 in 0 : vector<1x8x8xf32>, vector<1x8x8xf32>, vector<1x8x8xf32>, vector<1x8x8xf32>, vector<1x8x8xf32>, vector<1x8x8xf32>, vector<1x8x8xf32>, vector<1x8x8xf32> -> vector<8x8x8xf32>
      %73 = arith.truncf %72 : vector<8x8x8xf32> to vector<8x8x8xbf16>
      %74 = vector.extract_strided_slice %54 {offsets = [0, 0], sizes = [8, 8], strides = [1, 1]} : vector<8x64xf32> to vector<8x8xf32>
      %75 = vector.extract_strided_slice %54 {offsets = [0, 8], sizes = [8, 8], strides = [1, 1]} : vector<8x64xf32> to vector<8x8xf32>
      %76 = vector.extract_strided_slice %54 {offsets = [0, 16], sizes = [8, 8], strides = [1, 1]} : vector<8x64xf32> to vector<8x8xf32>
      %77 = vector.extract_strided_slice %54 {offsets = [0, 24], sizes = [8, 8], strides = [1, 1]} : vector<8x64xf32> to vector<8x8xf32>
      %78 = vector.extract_strided_slice %54 {offsets = [0, 32], sizes = [8, 8], strides = [1, 1]} : vector<8x64xf32> to vector<8x8xf32>
      %79 = vector.extract_strided_slice %54 {offsets = [0, 40], sizes = [8, 8], strides = [1, 1]} : vector<8x64xf32> to vector<8x8xf32>
      %80 = vector.extract_strided_slice %54 {offsets = [0, 48], sizes = [8, 8], strides = [1, 1]} : vector<8x64xf32> to vector<8x8xf32>
      %81 = vector.extract_strided_slice %54 {offsets = [0, 56], sizes = [8, 8], strides = [1, 1]} : vector<8x64xf32> to vector<8x8xf32>
      %82 = vector.shape_cast %74 : vector<8x8xf32> to vector<1x8x8xf32>
      %83 = vector.shape_cast %75 : vector<8x8xf32> to vector<1x8x8xf32>
      %84 = vector.shape_cast %76 : vector<8x8xf32> to vector<1x8x8xf32>
      %85 = vector.shape_cast %77 : vector<8x8xf32> to vector<1x8x8xf32>
      %86 = vector.shape_cast %78 : vector<8x8xf32> to vector<1x8x8xf32>
      %87 = vector.shape_cast %79 : vector<8x8xf32> to vector<1x8x8xf32>
      %88 = vector.shape_cast %80 : vector<8x8xf32> to vector<1x8x8xf32>
      %89 = vector.shape_cast %81 : vector<8x8xf32> to vector<1x8x8xf32>
      %90 = tpu.concatenate %82, %83, %84, %85, %86, %87, %88, %89 in 0 : vector<1x8x8xf32>, vector<1x8x8xf32>, vector<1x8x8xf32>, vector<1x8x8xf32>, vector<1x8x8xf32>, vector<1x8x8xf32>, vector<1x8x8xf32>, vector<1x8x8xf32> -> vector<8x8x8xf32>
      %91 = arith.truncf %90 : vector<8x8x8xf32> to vector<8x8x8xbf16>
      %92 = vector.extract_strided_slice %55 {offsets = [0, 0], sizes = [8, 8], strides = [1, 1]} : vector<8x32xf32> to vector<8x8xf32>
      %93 = vector.extract_strided_slice %55 {offsets = [0, 8], sizes = [8, 8], strides = [1, 1]} : vector<8x32xf32> to vector<8x8xf32>
      %94 = vector.extract_strided_slice %55 {offsets = [0, 16], sizes = [8, 8], strides = [1, 1]} : vector<8x32xf32> to vector<8x8xf32>
      %95 = vector.extract_strided_slice %55 {offsets = [0, 24], sizes = [8, 8], strides = [1, 1]} : vector<8x32xf32> to vector<8x8xf32>
      %96 = vector.shape_cast %92 : vector<8x8xf32> to vector<1x8x8xf32>
      %97 = vector.shape_cast %93 : vector<8x8xf32> to vector<1x8x8xf32>
      %98 = vector.shape_cast %94 : vector<8x8xf32> to vector<1x8x8xf32>
      %99 = vector.shape_cast %95 : vector<8x8xf32> to vector<1x8x8xf32>
      %100 = tpu.concatenate %96, %97, %98, %99 in 0 : vector<1x8x8xf32>, vector<1x8x8xf32>, vector<1x8x8xf32>, vector<1x8x8xf32> -> vector<4x8x8xf32>
      %101 = arith.truncf %100 : vector<4x8x8xf32> to vector<4x8x8xbf16>
      "tpu.trace_start"() <{level = 10 : i32, message = "gqd,gkd->gqk"}> : () -> ()
      %cst_34 = arith.constant dense<0.000000e+00> : vector<8x8x8xf32>
      %102 = tpu.matmul %73, %91, %cst_34 {dimension_numbers = #tpu.dot_dimension_numbers<[2], [2], [1], [1], [0, 0, 0, 1, 1, 1], [0], [0]>} : vector<8x8x8xbf16>, vector<8x8x8xbf16>, vector<8x8x8xf32> -> vector<8x8x8xf32>
      "tpu.trace_stop"() : () -> ()
      %103 = vector.extract_strided_slice %102 {offsets = [4, 0, 0], sizes = [4, 8, 8], strides = [1, 1, 1]} : vector<8x8x8xf32> to vector<4x8x8xf32>
      %104 = vector.extract_strided_slice %102 {offsets = [0, 0, 0], sizes = [4, 8, 8], strides = [1, 1, 1]} : vector<8x8x8xf32> to vector<4x8x8xf32>
      %105 = vector.shape_cast %5 : vector<1x8x8xi1> to vector<1x8x8xi1>
      %106 = vector.broadcast %105 : vector<1x8x8xi1> to vector<4x8x8xi1>
      %107 = arith.select %106, %103, %104 : vector<4x8x8xi1>, vector<4x8x8xf32>
      %cst_35 = arith.constant dense<0xFF800000> : vector<4x8xf32>
      %108 = vector.multi_reduction <maximumf>, %107, %cst_35 [2] : vector<4x8x8xf32> to vector<4x8xf32>
      %109 = vector.shape_cast %108 : vector<4x8xf32> to vector<4x8x1xf32>
      %110 = vector.broadcast %109 : vector<4x8x1xf32> to vector<4x8x8xf32>
      %111 = arith.subf %107, %110 : vector<4x8x8xf32>
      %112 = math.exp %111 : vector<4x8x8xf32>
      %cst_36 = arith.constant dense<0.000000e+00> : vector<4x8xf32>
      %113 = vector.multi_reduction <add>, %112, %cst_36 [2] : vector<4x8x8xf32> to vector<4x8xf32>
      %114 = vector.shape_cast %113 : vector<4x8xf32> to vector<4x8x1xf32>
      %115 = tpu.reciprocal %114 {approx = true} : vector<4x8x1xf32> -> vector<4x8x1xf32>
      %116 = vector.broadcast %115 : vector<4x8x1xf32> to vector<4x8x8xf32>
      %117 = arith.mulf %112, %116 : vector<4x8x8xf32>
      %118 = arith.truncf %117 : vector<4x8x8xf32> to vector<4x8x8xbf16>
      "tpu.trace_start"() <{level = 10 : i32, message = "gqk,gkd->gqd"}> : () -> ()
      %cst_37 = arith.constant dense<0.000000e+00> : vector<4x8x8xf32>
      %119 = tpu.matmul %118, %101, %cst_37 {dimension_numbers = #tpu.dot_dimension_numbers<[2], [1], [1], [2], [0, 0, 0, 1, 1, 2], [0], [0]>} : vector<4x8x8xbf16>, vector<4x8x8xbf16>, vector<4x8x8xf32> -> vector<4x8x8xf32>
      "tpu.trace_stop"() : () -> ()
      %120 = arith.truncf %119 : vector<4x8x8xf32> to vector<4x8x8xbf16>
      "tpu.trace_start"() <{level = 10 : i32, message = "gqd,gdn->gqn"}> : () -> ()
      %cst_38 = arith.constant dense<0.000000e+00> : vector<4x8x32xf32>
      %121 = tpu.matmul %120, %18, %cst_38 {dimension_numbers = #tpu.dot_dimension_numbers<[2], [1], [1], [2], [0, 0, 0, 1, 1, 2], [0], [0]>} : vector<4x8x8xbf16>, vector<4x8x32xbf16>, vector<4x8x32xf32> -> vector<4x8x32xf32>
      "tpu.trace_stop"() : () -> ()
      %cst_39 = arith.constant dense<0.000000e+00> : vector<8x32xf32>
      %122 = vector.multi_reduction <add>, %121, %cst_39 [0] : vector<4x8x32xf32> to vector<8x32xf32>
      %123 = vector.extract_strided_slice %50 {offsets = [1, 0, 0], sizes = [1, 8, 160], strides = [1, 1, 1]} : vector<2x8x160xf32> to vector<1x8x160xf32>
      %124 = vector.shape_cast %123 : vector<1x8x160xf32> to vector<8x160xf32>
      %125 = vector.extract_strided_slice %124 {offsets = [0, 0], sizes = [8, 64], strides = [1, 1]} : vector<8x160xf32> to vector<8x64xf32>
      %126 = vector.extract_strided_slice %124 {offsets = [0, 64], sizes = [8, 64], strides = [1, 1]} : vector<8x160xf32> to vector<8x64xf32>
      %127 = vector.extract_strided_slice %124 {offsets = [0, 128], sizes = [8, 32], strides = [1, 1]} : vector<8x160xf32> to vector<8x32xf32>
      %128 = vector.extract_strided_slice %125 {offsets = [0, 0], sizes = [8, 8], strides = [1, 1]} : vector<8x64xf32> to vector<8x8xf32>
      %129 = vector.extract_strided_slice %125 {offsets = [0, 8], sizes = [8, 8], strides = [1, 1]} : vector<8x64xf32> to vector<8x8xf32>
      %130 = vector.extract_strided_slice %125 {offsets = [0, 16], sizes = [8, 8], strides = [1, 1]} : vector<8x64xf32> to vector<8x8xf32>
      %131 = vector.extract_strided_slice %125 {offsets = [0, 24], sizes = [8, 8], strides = [1, 1]} : vector<8x64xf32> to vector<8x8xf32>
      %132 = vector.extract_strided_slice %125 {offsets = [0, 32], sizes = [8, 8], strides = [1, 1]} : vector<8x64xf32> to vector<8x8xf32>
      %133 = vector.extract_strided_slice %125 {offsets = [0, 40], sizes = [8, 8], strides = [1, 1]} : vector<8x64xf32> to vector<8x8xf32>
      %134 = vector.extract_strided_slice %125 {offsets = [0, 48], sizes = [8, 8], strides = [1, 1]} : vector<8x64xf32> to vector<8x8xf32>
      %135 = vector.extract_strided_slice %125 {offsets = [0, 56], sizes = [8, 8], strides = [1, 1]} : vector<8x64xf32> to vector<8x8xf32>
      %136 = vector.shape_cast %128 : vector<8x8xf32> to vector<1x8x8xf32>
      %137 = vector.shape_cast %129 : vector<8x8xf32> to vector<1x8x8xf32>
      %138 = vector.shape_cast %130 : vector<8x8xf32> to vector<1x8x8xf32>
      %139 = vector.shape_cast %131 : vector<8x8xf32> to vector<1x8x8xf32>
      %140 = vector.shape_cast %132 : vector<8x8xf32> to vector<1x8x8xf32>
      %141 = vector.shape_cast %133 : vector<8x8xf32> to vector<1x8x8xf32>
      %142 = vector.shape_cast %134 : vector<8x8xf32> to vector<1x8x8xf32>
      %143 = vector.shape_cast %135 : vector<8x8xf32> to vector<1x8x8xf32>
      %144 = tpu.concatenate %136, %137, %138, %139, %140, %141, %142, %143 in 0 : vector<1x8x8xf32>, vector<1x8x8xf32>, vector<1x8x8xf32>, vector<1x8x8xf32>, vector<1x8x8xf32>, vector<1x8x8xf32>, vector<1x8x8xf32>, vector<1x8x8xf32> -> vector<8x8x8xf32>
      %145 = arith.truncf %144 : vector<8x8x8xf32> to vector<8x8x8xbf16>
      %146 = vector.extract_strided_slice %126 {offsets = [0, 0], sizes = [8, 8], strides = [1, 1]} : vector<8x64xf32> to vector<8x8xf32>
      %147 = vector.extract_strided_slice %126 {offsets = [0, 8], sizes = [8, 8], strides = [1, 1]} : vector<8x64xf32> to vector<8x8xf32>
      %148 = vector.extract_strided_slice %126 {offsets = [0, 16], sizes = [8, 8], strides = [1, 1]} : vector<8x64xf32> to vector<8x8xf32>
      %149 = vector.extract_strided_slice %126 {offsets = [0, 24], sizes = [8, 8], strides = [1, 1]} : vector<8x64xf32> to vector<8x8xf32>
      %150 = vector.extract_strided_slice %126 {offsets = [0, 32], sizes = [8, 8], strides = [1, 1]} : vector<8x64xf32> to vector<8x8xf32>
      %151 = vector.extract_strided_slice %126 {offsets = [0, 40], sizes = [8, 8], strides = [1, 1]} : vector<8x64xf32> to vector<8x8xf32>
      %152 = vector.extract_strided_slice %126 {offsets = [0, 48], sizes = [8, 8], strides = [1, 1]} : vector<8x64xf32> to vector<8x8xf32>
      %153 = vector.extract_strided_slice %126 {offsets = [0, 56], sizes = [8, 8], strides = [1, 1]} : vector<8x64xf32> to vector<8x8xf32>
      %154 = vector.shape_cast %146 : vector<8x8xf32> to vector<1x8x8xf32>
      %155 = vector.shape_cast %147 : vector<8x8xf32> to vector<1x8x8xf32>
      %156 = vector.shape_cast %148 : vector<8x8xf32> to vector<1x8x8xf32>
      %157 = vector.shape_cast %149 : vector<8x8xf32> to vector<1x8x8xf32>
      %158 = vector.shape_cast %150 : vector<8x8xf32> to vector<1x8x8xf32>
      %159 = vector.shape_cast %151 : vector<8x8xf32> to vector<1x8x8xf32>
      %160 = vector.shape_cast %152 : vector<8x8xf32> to vector<1x8x8xf32>
      %161 = vector.shape_cast %153 : vector<8x8xf32> to vector<1x8x8xf32>
      %162 = tpu.concatenate %154, %155, %156, %157, %158, %159, %160, %161 in 0 : vector<1x8x8xf32>, vector<1x8x8xf32>, vector<1x8x8xf32>, vector<1x8x8xf32>, vector<1x8x8xf32>, vector<1x8x8xf32>, vector<1x8x8xf32>, vector<1x8x8xf32> -> vector<8x8x8xf32>
      %163 = arith.truncf %162 : vector<8x8x8xf32> to vector<8x8x8xbf16>
      %164 = vector.extract_strided_slice %127 {offsets = [0, 0], sizes = [8, 8], strides = [1, 1]} : vector<8x32xf32> to vector<8x8xf32>
      %165 = vector.extract_strided_slice %127 {offsets = [0, 8], sizes = [8, 8], strides = [1, 1]} : vector<8x32xf32> to vector<8x8xf32>
      %166 = vector.extract_strided_slice %127 {offsets = [0, 16], sizes = [8, 8], strides = [1, 1]} : vector<8x32xf32> to vector<8x8xf32>
      %167 = vector.extract_strided_slice %127 {offsets = [0, 24], sizes = [8, 8], strides = [1, 1]} : vector<8x32xf32> to vector<8x8xf32>
      %168 = vector.shape_cast %164 : vector<8x8xf32> to vector<1x8x8xf32>
      %169 = vector.shape_cast %165 : vector<8x8xf32> to vector<1x8x8xf32>
      %170 = vector.shape_cast %166 : vector<8x8xf32> to vector<1x8x8xf32>
      %171 = vector.shape_cast %167 : vector<8x8xf32> to vector<1x8x8xf32>
      %172 = tpu.concatenate %168, %169, %170, %171 in 0 : vector<1x8x8xf32>, vector<1x8x8xf32>, vector<1x8x8xf32>, vector<1x8x8xf32> -> vector<4x8x8xf32>
      %173 = arith.truncf %172 : vector<4x8x8xf32> to vector<4x8x8xbf16>
      "tpu.trace_start"() <{level = 10 : i32, message = "gqd,gkd->gqk"}> : () -> ()
      %cst_40 = arith.constant dense<0.000000e+00> : vector<8x8x8xf32>
      %174 = tpu.matmul %145, %163, %cst_40 {dimension_numbers = #tpu.dot_dimension_numbers<[2], [2], [1], [1], [0, 0, 0, 1, 1, 1], [0], [0]>} : vector<8x8x8xbf16>, vector<8x8x8xbf16>, vector<8x8x8xf32> -> vector<8x8x8xf32>
      "tpu.trace_stop"() : () -> ()
      %175 = vector.extract_strided_slice %174 {offsets = [4, 0, 0], sizes = [4, 8, 8], strides = [1, 1, 1]} : vector<8x8x8xf32> to vector<4x8x8xf32>
      %176 = vector.extract_strided_slice %174 {offsets = [0, 0, 0], sizes = [4, 8, 8], strides = [1, 1, 1]} : vector<8x8x8xf32> to vector<4x8x8xf32>
      %177 = vector.shape_cast %5 : vector<1x8x8xi1> to vector<1x8x8xi1>
      %178 = vector.broadcast %177 : vector<1x8x8xi1> to vector<4x8x8xi1>
      %179 = arith.select %178, %175, %176 : vector<4x8x8xi1>, vector<4x8x8xf32>
      %cst_41 = arith.constant dense<0xFF800000> : vector<4x8xf32>
      %180 = vector.multi_reduction <maximumf>, %179, %cst_41 [2] : vector<4x8x8xf32> to vector<4x8xf32>
      %181 = vector.shape_cast %180 : vector<4x8xf32> to vector<4x8x1xf32>
      %182 = vector.broadcast %181 : vector<4x8x1xf32> to vector<4x8x8xf32>
      %183 = arith.subf %179, %182 : vector<4x8x8xf32>
      %184 = math.exp %183 : vector<4x8x8xf32>
      %cst_42 = arith.constant dense<0.000000e+00> : vector<4x8xf32>
      %185 = vector.multi_reduction <add>, %184, %cst_42 [2] : vector<4x8x8xf32> to vector<4x8xf32>
      %186 = vector.shape_cast %185 : vector<4x8xf32> to vector<4x8x1xf32>
      %187 = tpu.reciprocal %186 {approx = true} : vector<4x8x1xf32> -> vector<4x8x1xf32>
      %188 = vector.broadcast %187 : vector<4x8x1xf32> to vector<4x8x8xf32>
      %189 = arith.mulf %184, %188 : vector<4x8x8xf32>
      %190 = arith.truncf %189 : vector<4x8x8xf32> to vector<4x8x8xbf16>
      "tpu.trace_start"() <{level = 10 : i32, message = "gqk,gkd->gqd"}> : () -> ()
      %cst_43 = arith.constant dense<0.000000e+00> : vector<4x8x8xf32>
      %191 = tpu.matmul %190, %173, %cst_43 {dimension_numbers = #tpu.dot_dimension_numbers<[2], [1], [1], [2], [0, 0, 0, 1, 1, 2], [0], [0]>} : vector<4x8x8xbf16>, vector<4x8x8xbf16>, vector<4x8x8xf32> -> vector<4x8x8xf32>
      "tpu.trace_stop"() : () -> ()
      %192 = arith.truncf %191 : vector<4x8x8xf32> to vector<4x8x8xbf16>
      "tpu.trace_start"() <{level = 10 : i32, message = "gqd,gdn->gqn"}> : () -> ()
      %cst_44 = arith.constant dense<0.000000e+00> : vector<4x8x32xf32>
      %193 = tpu.matmul %192, %18, %cst_44 {dimension_numbers = #tpu.dot_dimension_numbers<[2], [1], [1], [2], [0, 0, 0, 1, 1, 2], [0], [0]>} : vector<4x8x8xbf16>, vector<4x8x32xbf16>, vector<4x8x32xf32> -> vector<4x8x32xf32>
      "tpu.trace_stop"() : () -> ()
      %cst_45 = arith.constant dense<0.000000e+00> : vector<8x32xf32>
      %194 = vector.multi_reduction <add>, %193, %cst_45 [0] : vector<4x8x32xf32> to vector<8x32xf32>
      %195 = tpu.concatenate %122, %194 in 0 : vector<8x32xf32>, vector<8x32xf32> -> vector<16x32xf32>
      %196 = arith.addf %arg17, %195 : vector<16x32xf32>
      %197 = vector.broadcast %21 : vector<1x32xf32> to vector<16x32xf32>
      %198 = arith.addf %196, %197 : vector<16x32xf32>
      %cst_46 = arith.constant dense<0.000000e+00> : vector<16xf32>
      %199 = vector.multi_reduction <add>, %198, %cst_46 [1] : vector<16x32xf32> to vector<16xf32>
      %200 = vector.shape_cast %199 : vector<16xf32> to vector<16x1xf32>
      %cst_47 = arith.constant 3.200000e+01 : f32
      %201 = vector.broadcast %cst_47 : f32 to vector<16x1xf32>
      %202 = arith.divf %200, %201 : vector<16x1xf32>
      %203 = vector.broadcast %202 : vector<16x1xf32> to vector<16x32xf32>
      %204 = arith.subf %198, %203 : vector<16x32xf32>
      %205 = arith.mulf %204, %204 : vector<16x32xf32>
      %cst_48 = arith.constant dense<0.000000e+00> : vector<16xf32>
      %206 = vector.multi_reduction <add>, %205, %cst_48 [1] : vector<16x32xf32> to vector<16xf32>
      %207 = vector.shape_cast %206 : vector<16xf32> to vector<16x1xf32>
      %cst_49 = arith.constant 3.200000e+01 : f32
      %208 = vector.broadcast %cst_49 : f32 to vector<16x1xf32>
      %209 = arith.divf %207, %208 : vector<16x1xf32>
      %210 = vector.broadcast %202 : vector<16x1xf32> to vector<16x32xf32>
      %211 = arith.subf %198, %210 : vector<16x32xf32>
      %cst_50 = arith.constant 9.99999974E-6 : f32
      %212 = vector.broadcast %cst_50 : f32 to vector<16x1xf32>
      %213 = arith.addf %209, %212 : vector<16x1xf32>
      %214 = math.rsqrt %213 : vector<16x1xf32>
      %215 = vector.broadcast %214 : vector<16x1xf32> to vector<16x32xf32>
      %216 = arith.mulf %211, %215 : vector<16x32xf32>
      %217 = vector.broadcast %36 : vector<1x32xf32> to vector<16x32xf32>
      %218 = arith.mulf %216, %217 : vector<16x32xf32>
      %219 = vector.broadcast %39 : vector<1x32xf32> to vector<16x32xf32>
      %220 = arith.addf %218, %219 : vector<16x32xf32>
      %221 = arith.truncf %220 : vector<16x32xf32> to vector<16x32xbf16>
      %cst_51 = arith.constant dense<0.000000e+00> : vector<16x64xf32>
      %222 = tpu.matmul %221, %24, %cst_51 {dimension_numbers = #tpu.dot_dimension_numbers<[1], [0], [0], [1], [0, 0, 1, 1], [], []>} : vector<16x32xbf16>, vector<32x64xbf16>, vector<16x64xf32> -> vector<16x64xf32>
      %223 = vector.broadcast %27 : vector<1x64xf32> to vector<16x64xf32>
      %224 = arith.addf %222, %223 : vector<16x64xf32>
      %cst_52 = arith.constant 0.000000e+00 : f32
      %225 = vector.broadcast %cst_52 : f32 to vector<16x64xf32>
      %226 = arith.maximumf %224, %225 : vector<16x64xf32>
      %227 = arith.truncf %226 : vector<16x64xf32> to vector<16x64xbf16>
      %cst_53 = arith.constant dense<0.000000e+00> : vector<16x32xf32>
      %228 = tpu.matmul %227, %30, %cst_53 {dimension_numbers = #tpu.dot_dimension_numbers<[1], [0], [0], [1], [0, 0, 1, 1], [], []>} : vector<16x64xbf16>, vector<64x32xbf16>, vector<16x32xf32> -> vector<16x32xf32>
      %229 = vector.broadcast %33 : vector<1x32xf32> to vector<16x32xf32>
      %230 = arith.addf %228, %229 : vector<16x32xf32>
      %231 = arith.addf %220, %230 : vector<16x32xf32>
      %cst_54 = arith.constant dense<0.000000e+00> : vector<16xf32>
      %232 = vector.multi_reduction <add>, %231, %cst_54 [1] : vector<16x32xf32> to vector<16xf32>
      %233 = vector.shape_cast %232 : vector<16xf32> to vector<16x1xf32>
      %cst_55 = arith.constant 3.200000e+01 : f32
      %234 = vector.broadcast %cst_55 : f32 to vector<16x1xf32>
      %235 = arith.divf %233, %234 : vector<16x1xf32>
      %236 = vector.broadcast %235 : vector<16x1xf32> to vector<16x32xf32>
      %237 = arith.subf %231, %236 : vector<16x32xf32>
      %238 = arith.mulf %237, %237 : vector<16x32xf32>
      %cst_56 = arith.constant dense<0.000000e+00> : vector<16xf32>
      %239 = vector.multi_reduction <add>, %238, %cst_56 [1] : vector<16x32xf32> to vector<16xf32>
      %240 = vector.shape_cast %239 : vector<16xf32> to vector<16x1xf32>
      %cst_57 = arith.constant 3.200000e+01 : f32
      %241 = vector.broadcast %cst_57 : f32 to vector<16x1xf32>
      %242 = arith.divf %240, %241 : vector<16x1xf32>
      %243 = vector.broadcast %235 : vector<16x1xf32> to vector<16x32xf32>
      %244 = arith.subf %231, %243 : vector<16x32xf32>
      %cst_58 = arith.constant 9.99999974E-6 : f32
      %245 = vector.broadcast %cst_58 : f32 to vector<16x1xf32>
      %246 = arith.addf %242, %245 : vector<16x1xf32>
      %247 = math.rsqrt %246 : vector<16x1xf32>
      %248 = vector.broadcast %247 : vector<16x1xf32> to vector<16x32xf32>
      %249 = arith.mulf %244, %248 : vector<16x32xf32>
      %250 = vector.broadcast %42 : vector<1x32xf32> to vector<16x32xf32>
      %251 = arith.mulf %249, %250 : vector<16x32xf32>
      %252 = vector.broadcast %45 : vector<1x32xf32> to vector<16x32xf32>
      %253 = arith.addf %251, %252 : vector<16x32xf32>
      scf.yield %253 : vector<16x32xf32>
    }
    %c2_i32_4 = arith.constant 2 : i32
    %8 = vector.shape_cast %7 : vector<16x32xf32> to vector<2x8x32xf32>
    %c0_5 = arith.constant 0 : index
    %c0_6 = arith.constant 0 : index
    %c0_7 = arith.constant 0 : index
    %9 = vector.load %arg15[%c0_5, %c0_6, %c0_7] : memref<2x8x32xf32, #tpu.memory_space<vmem>>, vector<2x8x32xf32>
    tpu.vector_store %arg15[%c0_5, %c0_6, %c0_7], %8 {strides = array<i32>} : memref<2x8x32xf32, #tpu.memory_space<vmem>>, vector<2x8x32xf32>,
    return
  }
  func.func @transform_0(%arg0: i32) -> (i32, i32, i32) {
    %c0_i32 = arith.constant 0 : i32
    %c0_i32_0 = arith.constant 0 : i32
    %c0_i32_1 = arith.constant 0 : i32
    return %arg0, %c0_i32, %c0_i32_0 : i32, i32, i32
  }
  func.func @transform_1(%arg0: i32) -> (i32, i32) {
    %c0_i32 = arith.constant 0 : i32
    %c0_i32_0 = arith.constant 0 : i32
    %c0_i32_1 = arith.constant 0 : i32
    return %c0_i32, %c0_i32_0 : i32, i32
  }
  func.func @transform_2(%arg0: i32) -> (i32, i32, i32) {
    %c0_i32 = arith.constant 0 : i32
    %c0_i32_0 = arith.constant 0 : i32
    %c0_i32_1 = arith.constant 0 : i32
    %c0_i32_2 = arith.constant 0 : i32
    return %c0_i32, %c0_i32_0, %c0_i32_1 : i32, i32, i32
  }
  func.func @transform_3(%arg0: i32) -> (i32, i32, i32) {
    %c0_i32 = arith.constant 0 : i32
    %c0_i32_0 = arith.constant 0 : i32
    %c0_i32_1 = arith.constant 0 : i32
    %c0_i32_2 = arith.constant 0 : i32
    return %c0_i32, %c0_i32_0, %c0_i32_1 : i32, i32, i32
  }
  func.func @transform_4(%arg0: i32) -> (i32, i32, i32, i32) {
    %c0_i32 = arith.constant 0 : i32
    %c0_i32_0 = arith.constant 0 : i32
    %c0_i32_1 = arith.constant 0 : i32
    %c0_i32_2 = arith.constant 0 : i32
    %c0_i32_3 = arith.constant 0 : i32
    return %c0_i32, %c0_i32_0, %c0_i32_1, %c0_i32_2 : i32, i32, i32, i32
  }
  func.func @transform_5(%arg0: i32) -> (i32, i32, i32) {
    %c0_i32 = arith.constant 0 : i32
    %c0_i32_0 = arith.constant 0 : i32
    %c0_i32_1 = arith.constant 0 : i32
    %c0_i32_2 = arith.constant 0 : i32
    return %c0_i32, %c0_i32_0, %c0_i32_1 : i32, i32, i32
  }
  func.func @transform_6(%arg0: i32) -> (i32, i32, i32) {
    %c0_i32 = arith.constant 0 : i32
    %c0_i32_0 = arith.constant 0 : i32
    %c0_i32_1 = arith.constant 0 : i32
    %c0_i32_2 = arith.constant 0 : i32
    return %c0_i32, %c0_i32_0, %c0_i32_1 : i32, i32, i32
  }
  func.func @transform_7(%arg0: i32) -> (i32, i32, i32) {
    %c0_i32 = arith.constant 0 : i32
    %c0_i32_0 = arith.constant 0 : i32
    %c0_i32_1 = arith.constant 0 : i32
    %c0_i32_2 = arith.constant 0 : i32
    return %c0_i32, %c0_i32_0, %c0_i32_1 : i32, i32, i32
  }
  func.func @transform_8(%arg0: i32) -> (i32, i32, i32) {
    %c0_i32 = arith.constant 0 : i32
    %c0_i32_0 = arith.constant 0 : i32
    %c0_i32_1 = arith.constant 0 : i32
    %c0_i32_2 = arith.constant 0 : i32
    return %c0_i32, %c0_i32_0, %c0_i32_1 : i32, i32, i32
  }
  func.func @transform_9(%arg0: i32) -> (i32, i32, i32) {
    %c0_i32 = arith.constant 0 : i32
    %c0_i32_0 = arith.constant 0 : i32
    %c0_i32_1 = arith.constant 0 : i32
    %c0_i32_2 = arith.constant 0 : i32
    return %c0_i32, %c0_i32_0, %c0_i32_1 : i32, i32, i32
  }
  func.func @transform_10(%arg0: i32) -> (i32, i32, i32) {
    %c0_i32 = arith.constant 0 : i32
    %c0_i32_0 = arith.constant 0 : i32
    %c0_i32_1 = arith.constant 0 : i32
    %c0_i32_2 = arith.constant 0 : i32
    return %c0_i32, %c0_i32_0, %c0_i32_1 : i32, i32, i32
  }
  func.func @transform_11(%arg0: i32) -> (i32, i32, i32) {
    %c0_i32 = arith.constant 0 : i32
    %c0_i32_0 = arith.constant 0 : i32
    %c0_i32_1 = arith.constant 0 : i32
    %c0_i32_2 = arith.constant 0 : i32
    return %c0_i32, %c0_i32_0, %c0_i32_1 : i32, i32, i32
  }
  func.func @transform_12(%arg0: i32) -> (i32, i32, i32) {
    %c0_i32 = arith.constant 0 : i32
    %c0_i32_0 = arith.constant 0 : i32
    %c0_i32_1 = arith.constant 0 : i32
    %c0_i32_2 = arith.constant 0 : i32
    return %c0_i32, %c0_i32_0, %c0_i32_1 : i32, i32, i32
  }
  func.func @transform_13(%arg0: i32) -> (i32, i32, i32) {
    %c0_i32 = arith.constant 0 : i32
    %c0_i32_0 = arith.constant 0 : i32
    %c0_i32_1 = arith.constant 0 : i32
    %c0_i32_2 = arith.constant 0 : i32
    return %c0_i32, %c0_i32_0, %c0_i32_1 : i32, i32, i32
  }
  func.func @transform_14(%arg0: i32) -> (i32, i32, i32) {
    %c0_i32 = arith.constant 0 : i32
    %c0_i32_0 = arith.constant 0 : i32
    %c0_i32_1 = arith.constant 0 : i32
    return %arg0, %c0_i32, %c0_i32_0 : i32, i32, i32
  }
}

</mosaic_0001>

<bundles_post_ra>
// kernel: tpu_custom_call.1
= control target key start
LH: loop header
LB: loop body
LE: loop exit
PB: predicated region body
PF: predicated region fallthrough
CT: control target
= control target key end

     0   :  { %19 = vsyncpa [#allocation3], 0  ;;  %s2289_s0 = inlined_call_operand.hbm [shape: f32[2,8,32], index: 0, kind: input, shape index: {}]   ;;  %s2290_s1 = inlined_call_operand.hbm [shape: f32[8,8], index: 1, kind: input, shape index: {}]   ;;  %s2291_s2 = inlined_call_operand.vmem [shape: bf16[2,32,160], index: 2, kind: input, shape index: {}]   ;;  %s2292_s3 = inlined_call_operand.hbm [shape: f32[2,1,160], index: 3, kind: input, shape index: {}]   ;;  %s2293_s4 = inlined_call_operand.vmem [shape: bf16[2,4,8,32], index: 4, kind: input, shape index: {}]   ;;  %s2294_s5 = inlined_call_operand.vmem [shape: f32[2,1,32], index: 5, kind: input, shape index: {}]   ;;  %s2295_s6 = inlined_call_operand.hbm [shape: bf16[2,32,64], index: 6, kind: input, shape index: {}]   ;;  %s2296_s7 = inlined_call_operand.vmem [shape: f32[2,1,64], index: 7, kind: input, shape index: {}]   ;;  %s2297_s8 = inlined_call_operand.vmem [shape: bf16[2,64,32], index: 8, kind: input, shape index: {}]   ;;  %s2298_s9 = inlined_call_operand.vmem [shape: f32[2,1,32], index: 9, kind: input, shape index: {}]   ;;  %s2299_s10 = inlined_call_operand.vmem [shape: f32[2,1,32], index: 10, kind: input, shape index: {}]   ;;  %s2300_s11 = inlined_call_operand.hbm [shape: f32[2,1,32], index: 11, kind: input, shape index: {}]   ;;  %s2301_s12 = inlined_call_operand.vmem [shape: f32[2,1,32], index: 12, kind: input, shape index: {}]   ;;  %s2302_s13 = inlined_call_operand.hbm [shape: f32[2,1,32], index: 13, kind: input, shape index: {}]   ;;  %s2303_s14 = inlined_call_operand.hbm [shape: f32[2,8,32], index: 14, kind: output, shape index: {}]  }
   0x1   :  { %20 = vsyncpa [#allocation6], 0 }
   0x2   :  { %21 = vsyncpa [#allocation9], 0 }
   0x3   :  { %22 = vsyncpa [#allocation12], 0  ;;  %s42_s15 = sshll.u32 %s2290_s1, 4  ;;  %s43_s15 = int_to_ptr.hbm [resolvable:$true] %s42_s15 }
   0x4   :  { %23 = vsyncpa [#allocation4], 0  ;;  %s1806_s16 = smov [#allocation5]   ;;  %s71_s20 = sshll.u32 %s2295_s6, 4  ;;  %s72_s20 = int_to_ptr.hbm [resolvable:$true] %s71_s20 }
   0x5   :  { %s44_s17 = sshll.u32 %s1806_s16, 4  ;;  %s1807_s21 = smov [#allocation8]   ;;  %s45_s17 = int_to_ptr.vmem [resolvable:$true] %s44_s17 }
   0x6   :  { %47 = dma.hbm_to_vmem [thread:$0]  %s43_s15, 128, %s45_s17, [#allocation6]  }
   0x7   :  { %s73_s22 = sshll.u32 %s1807_s21, 4  ;;  %s1808_s23 = smov 64   ;;  %s74_s22 = int_to_ptr.vmem [resolvable:$true] %s73_s22 }
   0x8   :  { %s1809_s24 = smov 4   ;;  %s28_s1 = sshll.u32 %s2289_s0, 4  ;;  %s29_s1 = int_to_ptr.hbm [resolvable:$true] %s28_s1 }
   0x9   :  { %79 = dma.hbm_to_vmem [thread:$0]  %s72_s20, 512, %s74_s22, [#allocation9], %s1808_s23, %s1808_s23, %s1809_s24  }
   0xa   :  { %s1810_s27 = smov [#allocation2]   ;;  %s54_s6 = sshll.u32 %s2292_s3, 4  ;;  %s55_s6 = int_to_ptr.hbm [resolvable:$true] %s54_s6 }
   0xb   :  { %s30_s28 = sshll.u32 %s1810_s27, 4  ;;  %s1811_s15 = smov 128   ;;  %s31_s28 = int_to_ptr.vmem [resolvable:$true] %s30_s28 }
   0xc   :  { %s1812_s16 = smov 8   ;;  %s1813_s17 = smov [#allocation7]  }
   0xd   :  { %36 = dma.hbm_to_vmem [thread:$0]  %s29_s1, 256, %s31_s28, [#allocation3], %s1811_s15, %s1811_s15, %s1812_s16  }
   0xe   :  { %s56_s18 = sshll.u32 %s1813_s17, 4  ;;  %s1814_s19 = smov 32   ;;  %s57_s18 = int_to_ptr.vmem [resolvable:$true] %s56_s18 }
   0xf   :  { %s1815_s0 = smov 2   ;;  %s92_s22 = sshll.u32 %s2300_s11, 4  ;;  %s93_s22 = int_to_ptr.hbm [resolvable:$true] %s92_s22 }
  0x10   :  { %62 = dma.hbm_to_vmem [thread:$0]  %s55_s6, 64, %s57_s18, [#allocation6], %s1814_s19, %s1814_s19, %s1815_s0  }
  0x11   :  { %s1816_s23 = smov [#allocation10]   ;;  %s107_s26 = sshll.u32 %s2302_s13, 4  ;;  %s108_s26 = int_to_ptr.hbm [resolvable:$true] %s107_s26 }
  0x12   :  { %s94_s3 = sshll.u32 %s1816_s23, 4  ;;  %s1817_s1 = smov 16   ;;  %s95_s3 = int_to_ptr.vmem [resolvable:$true] %s94_s3 }
  0x13   :  { %s1818_s27 = smov 1   ;;  %s1819_s28 = smov [#allocation11]  }
  0x14   :  { %100 = dma.hbm_to_vmem [thread:$0]  %s93_s22, 32, %s95_s3, [#allocation9], %s1817_s1, %s1817_s1, %s1818_s27  }
  0x15   :  { %s109_s29 = sshll.u32 %s1819_s28, 4  ;;  %s110_s29 = int_to_ptr.vmem [resolvable:$true] %s109_s29 }
  0x16   :  { %115 = dma.hbm_to_vmem [thread:$0]  %s108_s26, 32, %s110_s29, [#allocation12], %s1817_s1, %s1817_s1, %s1818_s27  }
  0x17   :  { %1784 = dma.done.wait [#allocation3], 256  }
  0x18   :  { %1785 = vsyncadd [#allocation3], 4294967040 }
  0x19   :  { %1786 = dma.done.wait [#allocation6], 192  }
  0x1a   :  { %1787 = vsyncadd [#allocation6], 4294967104 }
  0x1b   :  { %1788 = dma.done.wait [#allocation9], 544  }
  0x1c   :  { %1789 = vsyncadd [#allocation9], 4294966752 }
  0x1d   :  { %1790 = dma.done.wait [#allocation12], 32  }
  0x1e   :  { %1791 = vsyncadd [#allocation12], 4294967264  ;;  %v141_v0 = vld [vmem:[#allocation2] sm:$0xff]   ;;  %v142_v1 = vld [vmem:[#allocation2 + $0x8] sm:$0xff]   ;;  %s1933_s11 = smov 0  }
  0x1f   :  { %v1926_v2 = vld [vmem:[#allocation5] sm:$0xff] }
  0x20   :  { %vm144_vm0 = vcmp.ne.f32.partialorder %v1926_v2, 0.0 }
  0x21 LB: > { %s1493_s13 = sshll.u32 %s1804_s11, 5  ;;  %v1958_v9 = vpack.c.bf16 %v1796_v1, %v1800_v0  ;;  %vm226_vm1 = vcmask 261120   ;;  %s1412_s18 = sshll.u32 %s1804_s11, 1  ;;  %vm307_vm2 = vcmask 64512   ;;  %vm552_vm3 = vcmask 1043456   ;;  %s1804_s11 = sphi %s1933_s11, %s150_s11   ;;  %v1800_v0 = vphi %v141_v0, %v2305_v0   ;;  %v1796_v1 = vphi %v142_v1, %v2304_v1  }
  0x22   : > { %s1950_s17 = scalar_lea.vmem %s2291_s2, %s1493_s13  ;;  %s161_s19 = scalar_lea.vmem [#allocation7], %s1412_s18  ;;  %vm1283_vm11 = vcmask 523264  }
  0x23   : > { %v1427_v3 = vld [vmem:[%s1950_s17 + $0x10] sm:$0xf]  ;;  %v1497_v4 = vld [vmem:[%s1950_s17 + $0x14] sm:$0xf0]  ;;  %v1419_v5 = vld [vmem:[%s1950_s17] sm:$0xf]  ;;  %s170_s6 = scalar_lea.vmem %s2294_s5, %s1804_s11 }
  0x24   : > { %v1428_v6 = vor.u32 %v1497_v4, %v1427_v3  ;;  %v1495_v7 = vld [vmem:[%s1950_s17 + $0x4] sm:$0xf0]  ;;  %v1963_v10 = vld [vmem:[%s161_s19] sm:$0x3]  ;;  %s1820_s0 = smov 104   ;;  %s1821_s20 = smov 88  }
  0x25   : > { %v1420_v8 = vor.u32 %v1495_v7, %v1419_v5  ;;  %v202_v11 = vperm.slane %v1963_v10, 0  ;;  %s1822_s21 = smov 120   ;;  %s1823_s22 = smov 112   ;;  %v1496_v47 = vld [vmem:[%s1950_s17 + $0x14] sm:$0xf] }
  0x26   : > { %236 = vmatpush.bf16.msra.mxu0 %v1428_v6  ;;  %s1824_s23 = smov 64   ;;  %s1825_s3 = smov 96   ;;  %v1429_v48 = vld [vmem:[%s1950_s17 + $0x18] sm:$0xf0]  ;;  %v1494_v50 = vld [vmem:[%s1950_s17 + $0x4] sm:$0xf] }
  0x27   : > { %s1826_s24 = smov 80   ;;  %s1827_s25 = smov 72   ;;  %v1432_v49 = vor.u32 %v1496_v47, %v1429_v48  ;;  %v1421_v51 = vld [vmem:[%s1950_s17 + $0x8] sm:$0xf0] }
  0x28   : > { %v1424_v52 = vor.u32 %v1494_v50, %v1421_v51  ;;  %s1498_s26 = sshll.u32 %s1804_s11, 4 }
  0x29   : > { %250 = vmatpush.bf16.msra.mxu1 %v1432_v49  ;;  %s2077_s28 = scalar_lea.vmem %s2293_s4, %s1498_s26 }
  0x2a   : > { %237 = vmatpush.bf16.msra.mxu0 %v1420_v8 }
  0x2d   : > { %1433 = vmatmul.msk.bf16.vlgmr.msra.gmra.mxu0 %vm226_vm1, %v1958_v9  ;;  %251 = vmatpush.bf16.msra.mxu1 %v1424_v52 }
  0x30   : > { %1434 = vmatmul.msk.bf16.vlgmr.msra.gmra.mxu1 %vm226_vm1, %v1958_v9  ;;  %v203_v9 = vperm.slane %v1963_v10, 1 }
  0xaa   : > { %v239_v12 = vpop.f32.mrf.mxu0 }
  0xab   : > { %v240_v13 = vadd.f32 %v239_v12, %v202_v11 }
  0xad   : > { %265 = vrot.lane.b32.xlu2 %v240_v13, %s1820_s0  ;;  %271 = vrot.lane.b32.xlu1 %v240_v13, %s1821_s20  ;;  %v280_v14 = vpack.c.bf16 %v240_v13, %v240_v13  ;;  %v253_v8 = vpop.f32.mrf.mxu1 }
  0xae   : > { %259 = vrot.lane.b32.xlu0 %v240_v13, %s1822_s21  ;;  %v2010_v12 = vadd.f32 %v253_v8, %v203_v9 }
  0xaf   : > { %v303_v15 = vunpack.c.l.b16 %v280_v14 }
  0xb1   : > { %v304_v16 = vpack.c.b16 %v303_v15, %v303_v15  ;;  %v298_v15 = vpack.c.bf16 %v2010_v12, %v2010_v12 }
  0xb5   : > { %262 = vrot.lane.b32.xlu1 %v240_v13, %s1823_s22  ;;  %305 = vrot.lane.b32.xlu2 %v304_v16, %s1824_s23  ;;  %v554_v16 = vsel %vm552_vm3, %v298_v15, 0 }
  0xb6   : > { %268 = vrot.lane.b32.xlu0 %v240_v13, %s1825_s3 }
  0xbd   : > { %274 = vrot.lane.b32.xlu1 %v240_v13, %s1826_s24  ;;  %277 = vrot.lane.b32.xlu2 %v240_v13, %s1827_s25  ;;  %v255_v13 = vpop.f32.mrf.mxu1 }
 0x107   : > { %v266_v17 = vpop.permute.xlu2 %265 }
 0x108   : > { %v283_v37 = vpack.c.bf16 %v266_v17, %v266_v17  ;;  %v241_v17 = vpop.f32.mrf.mxu0 }
 0x10a   : > { %v376_v42 = vunpack.c.l.b16 %v283_v37 }
 0x10c   : > { %v377_v46 = vpack.c.b16 %v376_v42, %v376_v42 }
 0x10f   : > { %v306_v18 = vpop.permute.xlu2 %305 }
 0x110   : > { %v312_v19 = vsel %vm307_vm2, %v306_v18, 0 }
 0x111   : > { %321 = vmatpush.bf16.xpose.msra.mxu2 %v312_v19 }
 0x117   : > { %v278_v31 = vpop.permute.xlu2 %277 }
 0x118   : > { %1435 = vmatmul.msk.bf16.vlgmr.msra.gmra.mxu2 %vm307_vm2, %v280_v14  ;;  %v287_v35 = vpack.c.bf16 %v278_v31, %v278_v31  ;;  %v2012_v14 = vadd.f32 %v255_v13, %v203_v9 }
 0x11a   : > { %v472_v40 = vunpack.c.l.b16 %v287_v35 }
 0x11c   : > { %v473_v44 = vpack.c.b16 %v472_v40, %v472_v40  ;;  %v242_v40 = vadd.f32 %v241_v17, %v202_v11 }
 0x11f   : > { %v272_v20 = vpop.permute.xlu1 %271 }
 0x120   : > { %v1978_v21 = vpack.c.bf16 %v272_v20, %v272_v20  ;;  %v260_v22 = vpop.permute.xlu0 %259 }
 0x121   : > { %v281_v23 = vpack.c.bf16 %v260_v22, %v260_v22 }
 0x122   : > { %v424_v24 = vunpack.c.l.b16 %v1978_v21 }
 0x123   : > { %v328_v25 = vunpack.c.l.b16 %v281_v23 }
 0x124   : > { %v425_v26 = vpack.c.b16 %v424_v24, %v424_v24 }
 0x125   : > { %v329_v27 = vpack.c.b16 %v328_v25, %v328_v25 }
 0x126   : > { %426 = vrot.lane.b32.xlu1 %v425_v26, %s1824_s23 }
 0x127   : > { %330 = vrot.lane.b32.xlu0 %v329_v27, %s1824_s23  ;;  %v263_v28 = vpop.permute.xlu1 %262 }
 0x128   : > { %v282_v29 = vpack.c.bf16 %v263_v28, %v263_v28  ;;  %v269_v30 = vpop.permute.xlu0 %268 }
 0x129   : > { %v284_v32 = vpack.c.bf16 %v269_v30, %v269_v30 }
 0x12a   : > { %v352_v33 = vunpack.c.l.b16 %v282_v29 }
 0x12b   : > { %v400_v34 = vunpack.c.l.b16 %v284_v32 }
 0x12c   : > { %v353_v36 = vpack.c.b16 %v352_v33, %v352_v33 }
 0x12d   : > { %v401_v38 = vpack.c.b16 %v400_v34, %v400_v34 }
 0x12e   : > { %354 = vrot.lane.b32.xlu2 %v353_v36, %s1824_s23 }
 0x12f   : > { %402 = vrot.lane.b32.xlu0 %v401_v38, %s1824_s23  ;;  %v275_v39 = vpop.permute.xlu1 %274 }
 0x130   : > { %v286_v41 = vpack.c.bf16 %v275_v39, %v275_v39 }
 0x132   : > { %v448_v43 = vunpack.c.l.b16 %v286_v41 }
 0x134   : > { %v449_v45 = vpack.c.b16 %v448_v43, %v448_v43 }
 0x136   : > { %450 = vrot.lane.b32.xlu1 %v449_v45, %s1824_s23  ;;  %474 = vrot.lane.b32.xlu2 %v473_v44, %s1824_s23 }
 0x137   : > { %378 = vrot.lane.b32.xlu0 %v377_v46, %s1824_s23 }
 0x188   : > { %v355_v53 = vpop.permute.xlu2 %354 }
 0x189   : > { %v360_v54 = vsel %vm307_vm2, %v355_v53, 0 }
 0x18a   : > { %369 = vmatpush.bf16.xpose.msrb.mxu0 %v360_v54 }
 0x190   : > { %v475_v63 = vpop.permute.xlu2 %474 }
 0x191   : > { %1437 = vmatmul.msk.bf16.vlgmr.msrb.gmra.mxu0 %vm307_vm2, %v282_v29  ;;  %v480_v7 = vsel %vm307_vm2, %v475_v63, 0 }
 0x198   : > { %v427_v55 = vpop.permute.xlu1 %426 }
 0x199   : > { %v331_v56 = vpop.permute.xlu0 %330  ;;  %v432_v57 = vsel %vm307_vm2, %v427_v55, 0 }
 0x19a   : > { %v336_v58 = vsel %vm307_vm2, %v331_v56, 0 }
 0x19b   : > { %345 = vmatpush.bf16.xpose.msra.mxu3 %v336_v58  ;;  %v323_v59 = vpop.f32.mrf.mxu2 }
 0x1a1   : > { %v403_v60 = vpop.permute.xlu0 %402 }
 0x1a2   : > { %1436 = vmatmul.msk.bf16.vlgmr.msra.gmra.mxu3 %vm307_vm2, %v281_v23  ;;  %v408_v61 = vsel %vm307_vm2, %v403_v60, 0 }
 0x1a3   : > { %441 = vmatpush.bf16.xpose.msrb.mxu3 %v432_v57  ;;  %417 = vmatpush.bf16.xpose.msrb.mxu2 %v408_v61  ;;  %v325_v62 = vpop.f32.mrf.mxu2 }
 0x1a8   : > { %v451_v3 = vpop.permute.xlu1 %450 }
 0x1a9   : > { %v456_v4 = vsel %vm307_vm2, %v451_v3, 0  ;;  %v379_v5 = vpop.permute.xlu0 %378 }
 0x1aa   : > { %1439 = vmatmul.msk.bf16.vlgmr.msrb.gmra.mxu2 %vm307_vm2, %v284_v32  ;;  %v384_v6 = vsel %vm307_vm2, %v379_v5, 0  ;;  %465 = vmatpush.bf16.xpose.msra.mxu0 %v456_v4  ;;  %v2054_v5 = vpack.c.bf16 %v242_v40, %v242_v40 }
 0x1ab   : > { %393 = vmatpush.bf16.xpose.msrb.mxu1 %v384_v6  ;;  %563 = vmatpush.bf16.msra.mxu2 %v554_v16 }
 0x1b1   : > { %1441 = vmatmul.msk.bf16.vlgmr.msra.gmra.mxu0 %vm307_vm2, %v286_v41 }
 0x1b2   : > { %1438 = vmatmul.msk.bf16.vlgmr.msrb.gmra.mxu1 %vm307_vm2, %v283_v37  ;;  %1440 = vmatmul.msk.bf16.vlgmr.msrb.gmra.mxu3 %vm307_vm2, %v1978_v21 }
 0x1b3   : > { %489 = vmatpush.bf16.xpose.msra.mxu1 %v480_v7  ;;  %v758_v7 = vunpack.c.l.b16 %v2054_v5 }
 0x1b5   : > { %v759_v9 = vpack.c.b16 %v758_v7, %v758_v7 }
 0x1c2   : > { %1442 = vmatmul.msk.bf16.vlgmr.msra.gmra.mxu1 %vm307_vm2, %v287_v35 }
 0x20e   : > { %v371_v18 = vpop.f32.mrf.mxu0 }
 0x216   : > { %v373_v19 = vpop.f32.mrf.mxu0 }
 0x225   : > { %v347_v20 = vpop.f32.mrf.mxu3 }
 0x22d   : > { %v349_v21 = vpop.f32.mrf.mxu3  ;;  %v419_v22 = vpop.f32.mrf.mxu2 }
 0x22e   : > { %v497_v23 = vsel %vm144_vm0, %v419_v22, %v323_v59  ;;  %v467_v24 = vpop.f32.mrf.mxu0 }
 0x22f   : > { %v395_v25 = vpop.f32.mrf.mxu1  ;;  %v499_v26 = vsel %vm144_vm0, %v467_v24, %v371_v18  ;;  %v501_v27 = vsel %vm307_vm2, %v497_v23, -inf }
 0x230   : > { %502 = vmax.xlane.f32.xlu0 %v501_v27  ;;  %v507_v28 = vsel %vm307_vm2, %v499_v26, -inf  ;;  %v166_v27 = vld [vmem:[%s2077_s28] sm:$0xf] }
 0x231   : > { %508 = vmax.xlane.f32.xlu2 %v507_v28  ;;  %v2087_v28 = vsel %vm552_vm3, %v166_v27, 0 }
 0x232   : > { %643 = vmatpush.bf16.msrb.mxu2 %v2087_v28 }
 0x235   : > { %v421_v29 = vpop.f32.mrf.mxu2  ;;  %v443_v30 = vpop.f32.mrf.mxu3 }
 0x236   : > { %v498_v31 = vsel %vm144_vm0, %v443_v30, %v347_v20  ;;  %v469_v32 = vpop.f32.mrf.mxu0  ;;  %v167_v20 = vld [vmem:[%s2077_s28 + $0x4] sm:$0xf] }
 0x237   : > { %v397_v33 = vpop.f32.mrf.mxu1  ;;  %v504_v34 = vsel %vm307_vm2, %v498_v31, -inf  ;;  %v2081_v21 = vsel %vm552_vm3, %v167_v20, 0 }
 0x238   : > { %505 = vmax.xlane.f32.xlu1 %v504_v34 }
 0x23d   : > { %v445_v35 = vpop.f32.mrf.mxu3 }
 0x23f   : > { %v491_v36 = vpop.f32.mrf.mxu1 }
 0x240   : > { %v500_v37 = vsel %vm144_vm0, %v491_v36, %v395_v25 }
 0x241   : > { %v510_v38 = vsel %vm307_vm2, %v500_v37, -inf }
 0x242   : > { %511 = vmax.xlane.f32.xlu2 %v510_v38 }
 0x247   : > { %v493_v39 = vpop.f32.mrf.mxu1 }
 0x25a   : > { %289 = vrot.lane.b32.xlu2 %v2010_v12, %s1822_s21 }
 0x262   : > { %714 = vrot.lane.b32.xlu2 %v242_v40, %s1822_s21 }
 0x26a   : > { %726 = vrot.lane.b32.xlu2 %v242_v40, %s1821_s20  ;;  %s196_s20 = scalar_lea.vmem %s2301_s12, %s1804_s11 }
 0x272   : > { %729 = vrot.lane.b32.xlu2 %v242_v40, %s1826_s24  ;;  %s173_s24 = scalar_lea.vmem [#allocation8], %s1498_s26 }
 0x2a3   : > { %v503_v41 = vpop.xlane.xlu0 %502 }
 0x2a4   : > { %v513_v42 = vsub.f32 %v497_v23, %v503_v41  ;;  %v509_v43 = vpop.xlane.xlu2 %508 }
 0x2a5   : > { %v515_v45 = vsub.f32 %v499_v26, %v509_v43 }
 0x2a6   : > { %v517_v44 = vmul.f32 1.442695, %v513_v42 }
 0x2a7   : > { %v521_v46 = vmul.f32 1.442695, %v515_v45 }
 0x2a8   : > { %1562 = vpow2.f32 %v517_v44 }
 0x2a9   : > { %1564 = vpow2.f32 %v521_v46 }
 0x2ab   : > { %v506_v11 = vpop.xlane.xlu1 %505 }
 0x2ac   : > { %v514_v52 = vsub.f32 %v498_v31, %v506_v11 }
 0x2ae   : > { %v1563_v47 = vpop.eup %1562  ;;  %v519_v54 = vmul.f32 1.442695, %v514_v52 }
 0x2af   : > { %v525_v48 = vsel %vm307_vm2, %v1563_v47, 0.0  ;;  %v2037_v10 = vpop.eup %1564 }
 0x2b0   : > { %526 = vadd.xlane.f32.xlu0 %v525_v48  ;;  %v531_v51 = vsel %vm307_vm2, %v2037_v10, 0.0 }
 0x2b5   : > { %v512_v49 = vpop.xlane.xlu2 %511 }
 0x2b6   : > { %v516_v50 = vsub.f32 %v500_v37, %v512_v49 }
 0x2b8   : > { %v523_v53 = vmul.f32 1.442695, %v516_v50  ;;  %532 = vadd.xlane.f32.xlu0 %v531_v51 }
 0x2ba   : > { %1566 = vpow2.f32 %v523_v53 }
 0x2bb   : > { %1568 = vpow2.f32 %v519_v54 }
 0x2bd   : > { %v290_v55 = vpop.permute.xlu2 %289 }
 0x2be   : > { %v299_v56 = vpack.c.bf16 %v290_v55, %v290_v55 }
 0x2c0   : > { %v2041_v57 = vpop.eup %1566  ;;  %v573_v58 = vsel %vm552_vm3, %v299_v56, 0 }
 0x2c1   : > { %582 = vmatpush.bf16.msra.mxu3 %v573_v58  ;;  %v534_v59 = vsel %vm307_vm2, %v2041_v57, 0.0  ;;  %v1569_v61 = vpop.eup %1568 }
 0x2c2   : > { %535 = vadd.xlane.f32.xlu1 %v534_v59  ;;  %v528_v3 = vsel %vm307_vm2, %v1569_v61, 0.0 }
 0x2c5   : > { %v715_v60 = vpop.permute.xlu2 %714  ;;  %662 = vmatpush.bf16.msrb.mxu3 %v2081_v21 }
 0x2c6   : > { %v2046_v62 = vpack.c.bf16 %v715_v60, %v715_v60 }
 0x2c8   : > { %v782_v63 = vunpack.c.l.b16 %v2046_v62 }
 0x2ca   : > { %v783_v4 = vpack.c.b16 %v782_v63, %v782_v63  ;;  %529 = vadd.xlane.f32.xlu1 %v528_v3  ;;  %v168_v3 = vld [vmem:[%s2077_s28 + $0x8] sm:$0xf] }
 0x2cc   : > { %292 = vrot.lane.b32.xlu0 %v2010_v12, %s1823_s22  ;;  %784 = vrot.lane.b32.xlu2 %v783_v4, %s1824_s23  ;;  %v2111_v4 = vsel %vm552_vm3, %v168_v3, 0 }
 0x2cd   : > { %v727_v6 = vpop.permute.xlu2 %726 }
 0x2ce   : > { %v2058_v8 = vpack.c.bf16 %v727_v6, %v727_v6  ;;  %v169_v6 = vld [vmem:[%s2077_s28 + $0xc] sm:$0xf]  ;;  %s190_s28 = scalar_lea.vmem %s2298_s9, %s1804_s11 }
 0x2cf   : > { %v2116_v7 = vsel %vm552_vm3, %v169_v6, 0 }
 0x2d0   : > { %v878_v13 = vunpack.c.l.b16 %v2058_v8 }
 0x2d2   : > { %v879_v16 = vpack.c.b16 %v878_v13, %v878_v13 }
 0x2d4   : > { %723 = vrot.lane.b32.xlu0 %v242_v40, %s1825_s3  ;;  %s178_s3 = scalar_lea.vmem %s2296_s7, %s1804_s11 }
 0x2d5   : > { %v730_v15 = vpop.permute.xlu2 %729 }
 0x2d6   : > { %v2064_v17 = vpack.c.bf16 %v730_v15, %v730_v15 }
 0x2d8   : > { %v902_v18 = vunpack.c.l.b16 %v2064_v17 }
 0x2da   : > { %v903_v19 = vpack.c.b16 %v902_v18, %v902_v18 }
 0x2dc   : > { %720 = vrot.lane.b32.xlu0 %v242_v40, %s1820_s0 }
 0x2e3   : > { %295 = vrot.lane.b32.xlu1 %v2010_v12, %s1820_s0 }
 0x2e4   : > { %760 = vrot.lane.b32.xlu0 %v759_v9, %s1824_s23 }
 0x2eb   : > { %717 = vrot.lane.b32.xlu1 %v242_v40, %s1823_s22 }
 0x2ec   : > { %880 = vrot.lane.b32.xlu0 %v879_v16, %s1824_s23 }
 0x2f3   : > { %732 = vrot.lane.b32.xlu1 %v242_v40, %s1827_s25 }
 0x2f4   : > { %904 = vrot.lane.b32.xlu0 %v903_v19, %s1824_s23 }
 0x323   : > { %v527_v12 = vpop.xlane.xlu0 %526 }
 0x324   : > { %1570 = vrcp.f32 %v527_v12 }
 0x326   : > { %v785_v38 = vpop.permute.xlu2 %784 }
 0x327   : > { %v790_v42 = vsel %vm307_vm2, %v785_v38, 0 }
 0x32a   : > { %v1571_v22 = vpop.eup %1570 }
 0x32b   : > { %v541_v23 = vmul.f32 %v1571_v22, %v1563_v47  ;;  %v533_v25 = vpop.xlane.xlu0 %532  ;;  %v753_v22 = vpack.c.bf16 %v2012_v14, %v2012_v14 }
 0x32c   : > { %1572 = vrcp.f32 %v533_v25 }
 0x32d   : > { %v545_v24 = vpack.c.bf16 %v541_v23, %v541_v23  ;;  %v1005_v27 = vsel %vm552_vm3, %v753_v22, 0 }
 0x32f   : > { %1443 = vmatmul.msk.bf16.vlgmr.msra.gmra.mxu2 %vm307_vm2, %v545_v24 }
 0x332   : > { %v1573_v29 = vpop.eup %1572 }
 0x333   : > { %v543_v32 = vmul.f32 %v1573_v29, %v2037_v10 }
 0x335   : > { %v536_v26 = vpop.xlane.xlu1 %535  ;;  %v547_v35 = vpack.c.bf16 %v543_v32, %v543_v32 }
 0x33d   : > { %v530_v30 = vpop.xlane.xlu1 %529 }
 0x33e   : > { %1574 = vrcp.f32 %v530_v30  ;;  %v293_v31 = vpop.permute.xlu0 %292 }
 0x33f   : > { %v300_v33 = vpack.c.bf16 %v293_v31, %v293_v31  ;;  %1576 = vrcp.f32 %v536_v26 }
 0x341   : > { %v592_v34 = vsel %vm552_vm3, %v300_v33, 0 }
 0x342   : > { %601 = vmatpush.bf16.msrb.mxu0 %v592_v34 }
 0x344   : > { %v1575_v36 = vpop.eup %1574 }
 0x345   : > { %v542_v37 = vmul.f32 %v1575_v36, %v1569_v61  ;;  %1445 = vmatmul.msk.bf16.vlgmr.msrb.gmra.mxu0 %vm307_vm2, %v547_v35  ;;  %v1577_v48 = vpop.eup %1576 }
 0x346   : > { %v724_v39 = vpop.permute.xlu0 %723  ;;  %v544_v49 = vmul.f32 %v1577_v48, %v2041_v57  ;;  %681 = vmatpush.bf16.msra.mxu0 %v2111_v4 }
 0x347   : > { %v546_v40 = vpack.c.bf16 %v542_v37, %v542_v37  ;;  %v2093_v41 = vpack.c.bf16 %v724_v39, %v724_v39 }
 0x348   : > { %v548_v54 = vpack.c.bf16 %v544_v49, %v544_v49 }
 0x349   : > { %v854_v43 = vunpack.c.l.b16 %v2093_v41  ;;  %1444 = vmatmul.msk.bf16.vlgmr.msra.gmra.mxu3 %vm307_vm2, %v546_v40 }
 0x34a   : > { %799 = vmatpush.bf16.xpose.msra.mxu3 %v790_v42 }
 0x34b   : > { %v855_v44 = vpack.c.b16 %v854_v43, %v854_v43 }
 0x34d   : > { %856 = vrot.lane.b32.xlu1 %v855_v44, %s1824_s23 }
 0x34e   : > { %v721_v45 = vpop.permute.xlu0 %720 }
 0x34f   : > { %v2099_v46 = vpack.c.bf16 %v721_v45, %v721_v45 }
 0x351   : > { %v830_v47 = vunpack.c.l.b16 %v2099_v46 }
 0x353   : > { %v831_v10 = vpack.c.b16 %v830_v47, %v830_v47 }
 0x355   : > { %832 = vrot.lane.b32.xlu1 %v831_v10, %s1824_s23  ;;  %v296_v11 = vpop.permute.xlu1 %295 }
 0x356   : > { %v301_v50 = vpack.c.bf16 %v296_v11, %v296_v11  ;;  %v761_v51 = vpop.permute.xlu0 %760 }
 0x357   : > { %v766_v52 = vsel %vm307_vm2, %v761_v51, 0 }
 0x358   : > { %v611_v53 = vsel %vm552_vm3, %v301_v50, 0  ;;  %775 = vmatpush.bf16.xpose.msra.mxu2 %v766_v52 }
 0x359   : > { %620 = vmatpush.bf16.msrb.mxu1 %v611_v53 }
 0x35c   : > { %1446 = vmatmul.msk.bf16.vlgmr.msrb.gmra.mxu1 %vm307_vm2, %v548_v54 }
 0x35d   : > { %v718_v55 = vpop.permute.xlu1 %717  ;;  %700 = vmatpush.bf16.msra.mxu1 %v2116_v7 }
 0x35e   : > { %v737_v56 = vpack.c.bf16 %v718_v55, %v718_v55  ;;  %v881_v15 = vpop.permute.xlu0 %880 }
 0x35f   : > { %v886_v34 = vsel %vm307_vm2, %v881_v15, 0 }
 0x360   : > { %v806_v58 = vunpack.c.l.b16 %v737_v56 }
 0x362   : > { %v807_v59 = vpack.c.b16 %v806_v58, %v806_v58 }
 0x364   : > { %808 = vrot.lane.b32.xlu2 %v807_v59, %s1824_s23 }
 0x365   : > { %v733_v57 = vpop.permute.xlu1 %732 }
 0x366   : > { %v742_v60 = vpack.c.bf16 %v733_v57, %v733_v57  ;;  %v905_v23 = vpop.permute.xlu0 %904 }
 0x367   : > { %v910_v26 = vsel %vm307_vm2, %v905_v23, 0  ;;  %v2175_v23 = vld [vmem:[%s170_s6] ss:$0 sm:$0xff]  ;;  %s181_s6 = scalar_lea.vmem %s2297_s8, %s1493_s13 }
 0x368   : > { %v926_v61 = vunpack.c.l.b16 %v742_v60 }
 0x36a   : > { %v927_v63 = vpack.c.b16 %v926_v61, %v926_v61 }
 0x36c   : > { %928 = vrot.lane.b32.xlu2 %v927_v63, %s1824_s23  ;;  %s194_s23 = scalar_lea.vmem [#allocation10], %s1804_s11 }
 0x3b2   : > { %v565_v9 = vpop.f32.mrf.mxu2 }
 0x3b3   : > { %v626_v13 = vpack.c.bf16 %v565_v9, %v565_v9 }
 0x3b5   : > { %1447 = vmatmul.msk.bf16.vlgmr.msrb.gmra.mxu2 %vm307_vm2, %v626_v13 }
 0x3ba   : > { %v567_v16 = vpop.f32.mrf.mxu2 }
 0x3be   : > { %v809_v18 = vpop.permute.xlu2 %808 }
 0x3bf   : > { %v814_v19 = vsel %vm307_vm2, %v809_v18, 0  ;;  %v857_v12 = vpop.permute.xlu1 %856 }
 0x3c0   : > { %v862_v20 = vsel %vm307_vm2, %v857_v12, 0  ;;  %823 = vmatpush.bf16.xpose.msrb.mxu0 %v814_v19 }
 0x3c1   : > { %871 = vmatpush.bf16.xpose.msrb.mxu2 %v862_v20 }
 0x3c2   : > { %v603_v24 = vpop.f32.mrf.mxu0 }
 0x3c3   : > { %v628_v25 = vpack.c.bf16 %v603_v24, %v603_v24 }
 0x3c5   : > { %1449 = vmatmul.msk.bf16.vlgmr.msra.gmra.mxu0 %vm307_vm2, %v628_v25  ;;  %1451 = vmatmul.msk.bf16.vlgmr.msra.gmra.mxu2 %vm307_vm2, %v2054_v5 }
 0x3c6   : > { %v929_v5 = vpop.permute.xlu2 %928 }
 0x3c7   : > { %v833_v29 = vpop.permute.xlu1 %832  ;;  %v934_v38 = vsel %vm307_vm2, %v929_v5, 0 }
 0x3c8   : > { %919 = vmatpush.bf16.xpose.msra.mxu0 %v910_v26  ;;  %v838_v30 = vsel %vm307_vm2, %v833_v29, 0 }
 0x3c9   : > { %1014 = vmatpush.bf16.msra.mxu2 %v1005_v27  ;;  %847 = vmatpush.bf16.xpose.msrb.mxu1 %v838_v30 }
 0x3ca   : > { %v605_v31 = vpop.f32.mrf.mxu0 }
 0x3cc   : > { %v584_v32 = vpop.f32.mrf.mxu3 }
 0x3cd   : > { %v627_v33 = vpack.c.bf16 %v584_v32, %v584_v32 }
 0x3cf   : > { %1448 = vmatmul.msk.bf16.vlgmr.msrb.gmra.mxu3 %vm307_vm2, %v627_v33 }
 0x3d0   : > { %895 = vmatpush.bf16.xpose.msrb.mxu3 %v886_v34 }
 0x3d4   : > { %v586_v35 = vpop.f32.mrf.mxu3 }
 0x3d5   : > { %1453 = vmatmul.msk.bf16.vlgmr.msrb.gmra.mxu0 %vm307_vm2, %v737_v56  ;;  %1455 = vmatmul.msk.bf16.vlgmr.msrb.gmra.mxu2 %vm307_vm2, %v2093_v41 }
 0x3d6   : > { %1091 = vmatpush.bf16.msrb.mxu2 %v2087_v28 }
 0x3d9   : > { %v622_v36 = vpop.f32.mrf.mxu1 }
 0x3da   : > { %v629_v37 = vpack.c.bf16 %v622_v36, %v622_v36 }
 0x3dc   : > { %1450 = vmatmul.msk.bf16.vlgmr.msra.gmra.mxu1 %vm307_vm2, %v629_v37 }
 0x3dd   : > { %943 = vmatpush.bf16.xpose.msra.mxu1 %v934_v38 }
 0x3df   : > { %1452 = vmatmul.msk.bf16.vlgmr.msra.gmra.mxu3 %vm307_vm2, %v2046_v62 }
 0x3e1   : > { %v624_v39 = vpop.f32.mrf.mxu1 }
 0x3e5   : > { %1457 = vmatmul.msk.bf16.vlgmr.msra.gmra.mxu0 %vm307_vm2, %v2064_v17 }
 0x3ec   : > { %1454 = vmatmul.msk.bf16.vlgmr.msrb.gmra.mxu1 %vm307_vm2, %v2099_v46 }
 0x3ef   : > { %1456 = vmatmul.msk.bf16.vlgmr.msrb.gmra.mxu3 %vm307_vm2, %v2058_v8 }
 0x3fc   : > { %1458 = vmatmul.msk.bf16.vlgmr.msra.gmra.mxu1 %vm307_vm2, %v742_v60 }
 0x438   : > { %v645_v28 = vpop.f32.mrf.mxu2 }
 0x439   : > { %v706_v47 = vsel %vm226_vm1, %v645_v28, 0.0 }
 0x440   : > { %v647_v40 = vpop.f32.mrf.mxu2 }
 0x442   : > { %v683_v41 = vpop.f32.mrf.mxu0 }
 0x443   : > { %v709_v46 = vsel %vm226_vm1, %v683_v41, 0.0 }
 0x448   : > { %v777_v42 = vpop.f32.mrf.mxu2 }
 0x44a   : > { %v685_v43 = vpop.f32.mrf.mxu0 }
 0x450   : > { %v779_v44 = vpop.f32.mrf.mxu2 }
 0x452   : > { %v664_v45 = vpop.f32.mrf.mxu3  ;;  %v825_v62 = vpop.f32.mrf.mxu0 }
 0x453   : > { %v707_v17 = vsel %vm226_vm1, %v664_v45, 0.0 }
 0x454   : > { %v708_v48 = vadd.f32 %v707_v17, %v706_v47  ;;  %v1828_v47 = vmov 32.0  }
 0x456   : > { %v710_v10 = vadd.f32 %v709_v46, %v708_v48 }
 0x458   : > { %v873_v11 = vpop.f32.mrf.mxu2 }
 0x459   : > { %v949_v8 = vsel %vm144_vm0, %v873_v11, %v777_v42  ;;  %v702_v49 = vpop.f32.mrf.mxu1 }
 0x45a   : > { %v711_v50 = vsel %vm226_vm1, %v702_v49, 0.0  ;;  %v666_v51 = vpop.f32.mrf.mxu3  ;;  %v827_v52 = vpop.f32.mrf.mxu0  ;;  %v953_v53 = vsel %vm307_vm2, %v949_v8, -inf }
 0x45b   : > { %v712_v54 = vadd.f32 %v711_v50, %v710_v10  ;;  %954 = vmax.xlane.f32.xlu1 %v953_v53 }
 0x45d   : > { %v1152_v22 = vadd.f32 %v1800_v0, %v712_v54 }
 0x45f   : > { %v1157_v24 = vadd.f32 %v2175_v23, %v1152_v22 }
 0x460   : > { %v875_v55 = vpop.f32.mrf.mxu2 }
 0x461   : > { %v704_v56 = vpop.f32.mrf.mxu1  ;;  %v1159_v25 = vsel %vm226_vm1, %v1157_v24, 0.0 }
 0x462   : > { %v801_v58 = vpop.f32.mrf.mxu3  ;;  %v921_v59 = vpop.f32.mrf.mxu0 }
 0x463   : > { %v951_v57 = vsel %vm144_vm0, %v921_v59, %v825_v62 }
 0x464   : > { %v959_v60 = vsel %vm307_vm2, %v951_v57, -inf }
 0x465   : > { %960 = vmax.xlane.f32.xlu2 %v959_v60 }
 0x469   : > { %v849_v61 = vpop.f32.mrf.mxu1 }
 0x46a   : > { %v803_v63 = vpop.f32.mrf.mxu3  ;;  %v923_v3 = vpop.f32.mrf.mxu0 }
 0x471   : > { %v851_v6 = vpop.f32.mrf.mxu1 }
 0x472   : > { %v897_v9 = vpop.f32.mrf.mxu3 }
 0x473   : > { %v950_v13 = vsel %vm144_vm0, %v897_v9, %v801_v58 }
 0x474   : > { %v956_v15 = vsel %vm307_vm2, %v950_v13, -inf }
 0x475   : > { %957 = vmax.xlane.f32.xlu0 %v956_v15 }
 0x479   : > { %v945_v16 = vpop.f32.mrf.mxu1 }
 0x47a   : > { %v952_v18 = vsel %vm144_vm0, %v945_v16, %v849_v61  ;;  %v899_v19 = vpop.f32.mrf.mxu3 }
 0x47b   : > { %v962_v12 = vsel %vm307_vm2, %v952_v18, -inf }
 0x47c   : > { %963 = vmax.xlane.f32.xlu1 %v962_v12 }
 0x481   : > { %v947_v20 = vpop.f32.mrf.mxu1 }
 0x495   : > { %744 = vrot.lane.b32.xlu1 %v2012_v14, %s1822_s21  ;;  %s192_s21 = scalar_lea.vmem %s2299_s10, %s1804_s11 }
 0x4bf   : > { %1160 = vadd.xlane.f32.xlu1 %v1159_v25 }
 0x4ce   : > { %v955_v26 = vpop.xlane.xlu1 %954 }
 0x4cf   : > { %v965_v30 = vsub.f32 %v949_v8, %v955_v26 }
 0x4d1   : > { %v969_v32 = vmul.f32 1.442695, %v965_v30 }
 0x4d8   : > { %v961_v27 = vpop.xlane.xlu2 %960 }
 0x4d9   : > { %v967_v29 = vsub.f32 %v951_v57, %v961_v27 }
 0x4db   : > { %v973_v31 = vmul.f32 1.442695, %v967_v29 }
 0x4dd   : > { %1578 = vpow2.f32 %v973_v31 }
 0x4de   : > { %1580 = vpow2.f32 %v969_v32 }
 0x4e3   : > { %v1579_v33 = vpop.eup %1578 }
 0x4e4   : > { %v983_v0 = vsel %vm307_vm2, %v1579_v33, 0.0  ;;  %v1581_v34 = vpop.eup %1580 }
 0x4e5   : > { %984 = vadd.xlane.f32.xlu0 %v983_v0  ;;  %v977_v35 = vsel %vm307_vm2, %v1581_v34, 0.0 }
 0x4e8   : > { %v958_v5 = vpop.xlane.xlu0 %957 }
 0x4e9   : > { %v966_v38 = vsub.f32 %v950_v13, %v958_v5 }
 0x4eb   : > { %v971_v28 = vmul.f32 1.442695, %v966_v38 }
 0x4ed   : > { %978 = vadd.xlane.f32.xlu0 %v977_v35 }
 0x4ef   : > { %v964_v36 = vpop.xlane.xlu1 %963 }
 0x4f0   : > { %v968_v37 = vsub.f32 %v952_v18, %v964_v36 }
 0x4f2   : > { %v975_v39 = vmul.f32 1.442695, %v968_v37 }
 0x4f4   : > { %1582 = vpow2.f32 %v975_v39 }
 0x4f5   : > { %1584 = vpow2.f32 %v971_v28 }
 0x4f6   : > { %1586 = vrcp.f32 %v1828_v47 }
 0x4fa   : > { %v1583_v40 = vpop.eup %1582 }
 0x4fb   : > { %v986_v41 = vsel %vm307_vm2, %v1583_v40, 0.0  ;;  %v1585_v42 = vpop.eup %1584 }
 0x4fc   : > { %987 = vadd.xlane.f32.xlu2 %v986_v41  ;;  %v980_v43 = vsel %vm307_vm2, %v1585_v42, 0.0  ;;  %v1587_v17 = vpop.eup %1586 }
 0x4fd   : > { %v1166_v48 = vmul.f32 32.0, %v1587_v17  ;;  %vm1170_vm4 = vweird.f32 %v1587_v17 }
 0x4ff   : > { %v1167_v46 = vsub.f32 1.0, %v1166_v48 }
 0x501   : > { %747 = vrot.lane.b32.xlu0 %v2012_v14, %s1823_s22  ;;  %v1168_v10 = vmul.f32 %v1587_v17, %v1167_v46 }
 0x503   : > { %v1169_v11 = vadd.f32 %v1587_v17, %v1168_v10 }
 0x504   : > { %981 = vadd.xlane.f32.xlu2 %v980_v43 }
 0x505   : > { %v2194_v8 = vsel %vm1170_vm4, %v1587_v17, %v1169_v11 }
 0x507   : > { %v745_v44 = vpop.permute.xlu1 %744 }
 0x508   : > { %v754_v45 = vpack.c.bf16 %v745_v44, %v745_v44 }
 0x50a   : > { %v1024_v62 = vsel %vm552_vm3, %v754_v45, 0 }
 0x50b   : > { %1033 = vmatpush.bf16.msra.mxu3 %v1024_v62 }
 0x50f   : > { %1107 = vmatpush.bf16.msrb.mxu3 %v2081_v21 }
 0x51c   : > { %750 = vrot.lane.b32.xlu2 %v2012_v14, %s1820_s0 }
 0x532   : > { %v1161_v49 = vpop.xlane.xlu1 %1160 }
 0x533   : > { %v1172_v50 = vmul.f32 %v2194_v8, %v1161_v49 }
 0x535   : > { %v2197_v51 = vsub.f32 %v1157_v24, %v1172_v50 }
 0x537   : > { %v1176_v21 = vmul.f32 %v2197_v51, %v2197_v51 }
 0x539   : > { %v1178_v14 = vsel %vm226_vm1, %v1176_v21, 0.0 }
 0x545   : > { %1179 = vadd.xlane.f32.xlu2 %v1178_v14 }
 0x558   : > { %v985_v52 = vpop.xlane.xlu0 %984 }
 0x560   : > { %v979_v53 = vpop.xlane.xlu0 %978 }
 0x561   : > { %1588 = vrcp.f32 %v979_v53  ;;  %v1500_v53 = vld [vmem:[%s173_s24] sm:$0xff] }
 0x562   : > { %1590 = vrcp.f32 %v985_v52 }
 0x567   : > { %v1589_v54 = vpop.eup %1588 }
 0x568   : > { %v993_v55 = vmul.f32 %v1589_v54, %v1581_v34  ;;  %v1591_v59 = vpop.eup %1590 }
 0x569   : > { %v995_v60 = vmul.f32 %v1591_v59, %v1579_v33 }
 0x56a   : > { %v997_v56 = vpack.c.bf16 %v993_v55, %v993_v55 }
 0x56b   : > { %v999_v6 = vpack.c.bf16 %v995_v60, %v995_v60 }
 0x56c   : > { %1459 = vmatmul.msk.bf16.vlgmr.msra.gmra.mxu2 %vm307_vm2, %v997_v56 }
 0x56f   : > { %v988_v58 = vpop.xlane.xlu2 %987 }
 0x570   : > { %1592 = vrcp.f32 %v988_v58 }
 0x573   : > { %v748_v57 = vpop.permute.xlu0 %747 }
 0x574   : > { %v755_v61 = vpack.c.bf16 %v748_v57, %v748_v57 }
 0x576   : > { %v1043_v63 = vsel %vm552_vm3, %v755_v61, 0  ;;  %v1593_v9 = vpop.eup %1592 }
 0x577   : > { %1052 = vmatpush.bf16.msrb.mxu0 %v1043_v63  ;;  %v982_v3 = vpop.xlane.xlu2 %981  ;;  %v996_v18 = vmul.f32 %v1593_v9, %v1583_v40 }
 0x578   : > { %1594 = vrcp.f32 %v982_v3 }
 0x579   : > { %v1000_v22 = vpack.c.bf16 %v996_v18, %v996_v18 }
 0x57a   : > { %1461 = vmatmul.msk.bf16.vlgmr.msrb.gmra.mxu0 %vm307_vm2, %v999_v6 }
 0x57b   : > { %1123 = vmatpush.bf16.msra.mxu0 %v2111_v4 }
 0x57e   : > { %v1595_v13 = vpop.eup %1594 }
 0x57f   : > { %v994_v15 = vmul.f32 %v1595_v13, %v1585_v42  ;;  %v751_v16 = vpop.permute.xlu2 %750 }
 0x580   : > { %v756_v19 = vpack.c.bf16 %v751_v16, %v751_v16  ;;  %v1556_v16 = vld [vmem:[%s192_s21] ss:$0 sm:$0xff]  ;;  %s198_s21 = scalar_lea.vmem [#allocation11], %s1804_s11  ;;  %s150_s11 = sadd.s32 1, %s1804_s11  }
 0x581   : > { %v998_v12 = vpack.c.bf16 %v994_v15, %v994_v15  ;;  %p147_p0 = scmp.ge.s32.totalorder %s150_s11, 2  }
 0x582   : > { %v1062_v20 = vsel %vm552_vm3, %v756_v19, 0  ;;  %s1829_s25 = smov (%p147_p0), [#allocation13]  }
 0x583   : > { %1460 = vmatmul.msk.bf16.vlgmr.msra.gmra.mxu3 %vm307_vm2, %v998_v12  ;;  %1071 = vmatpush.bf16.msrb.mxu1 %v1062_v20  ;;  %v1557_v20 = vld [vmem:[%s194_s23] ss:$0 sm:$0xff]  ;;  %s1364_s26 = sshll.u32 (%p147_p0), %s1829_s25, 4  ;;  %s1365_s26 = int_to_ptr.vmem [resolvable:$true] %s1364_s26 }
 0x586   : > { %1462 = vmatmul.msk.bf16.vlgmr.msrb.gmra.mxu1 %vm307_vm2, %v1000_v22 }
 0x587   : > { %1139 = vmatpush.bf16.msra.mxu1 %v2116_v7 }
 0x5b8   : > { %v1180_v21 = vpop.xlane.xlu2 %1179 }
 0x5ef   : > { %v1016_v4 = vpop.f32.mrf.mxu2 }
 0x5f0   : > { %v1077_v24 = vpack.c.bf16 %v1016_v4, %v1016_v4 }
 0x5f2   : > { %1463 = vmatmul.msk.bf16.vlgmr.msrb.gmra.mxu2 %vm307_vm2, %v1077_v24 }
 0x5f7   : > { %v1018_v25 = vpop.f32.mrf.mxu2  ;;  %v1054_v26 = vpop.f32.mrf.mxu0 }
 0x5f8   : > { %v1079_v27 = vpack.c.bf16 %v1054_v26, %v1054_v26 }
 0x5fa   : > { %1465 = vmatmul.msk.bf16.vlgmr.msra.gmra.mxu0 %vm307_vm2, %v1079_v27 }
 0x5ff   : > { %v1056_v29 = vpop.f32.mrf.mxu0 }
 0x600   : > { %v1505_v29 = vld [vmem:[%s181_s6 + $0x10] sm:$0xff] }
 0x603   : > { %v1073_v30 = vpop.f32.mrf.mxu1 }
 0x604   : > { %v1080_v31 = vpack.c.bf16 %v1073_v30, %v1073_v30  ;;  %v1504_v30 = vld [vmem:[%s181_s6 + $0x8] sm:$0xff] }
 0x606   : > { %v1035_v32 = vpop.f32.mrf.mxu3  ;;  %1466 = vmatmul.msk.bf16.vlgmr.msra.gmra.mxu1 %vm307_vm2, %v1080_v31  ;;  %v1503_v31 = vld [vmem:[%s181_s6] sm:$0xff] }
 0x607   : > { %v1078_v33 = vpack.c.bf16 %v1035_v32, %v1035_v32 }
 0x609   : > { %1464 = vmatmul.msk.bf16.vlgmr.msrb.gmra.mxu3 %vm307_vm2, %v1078_v33  ;;  %v1558_v33 = vld [vmem:[%s178_s3] ss:$0 sm:$0xff] }
 0x60b   : > { %v1075_v7 = vpop.f32.mrf.mxu1 }
 0x60e   : > { %v1037_v0 = vpop.f32.mrf.mxu3 }
 0x675   : > { %v1093_v34 = vpop.f32.mrf.mxu2 }
 0x676   : > { %v1145_v28 = vsel %vm226_vm1, %v1093_v34, 0.0 }
 0x677   : > { %v1125_v35 = vpop.f32.mrf.mxu0 }
 0x678   : > { %v1148_v42 = vsel %vm226_vm1, %v1125_v35, 0.0 }
 0x67d   : > { %v1095_v5 = vpop.f32.mrf.mxu2 }
 0x67f   : > { %v1127_v36 = vpop.f32.mrf.mxu0 }
 0x683   : > { %v1141_v37 = vpop.f32.mrf.mxu1 }
 0x684   : > { %v1150_v44 = vsel %vm226_vm1, %v1141_v37, 0.0  ;;  %v1559_v37 = vld [vmem:[%s190_s28] ss:$0 sm:$0xff] }
 0x68b   : > { %v1143_v38 = vpop.f32.mrf.mxu1 }
 0x68c   : > { %v1109_v39 = vpop.f32.mrf.mxu3 }
 0x68d   : > { %v1146_v40 = vsel %vm226_vm1, %v1109_v39, 0.0 }
 0x68e   : > { %v1147_v41 = vadd.f32 %v1146_v40, %v1145_v28 }
 0x690   : > { %v1149_v43 = vadd.f32 %v1148_v42, %v1147_v41 }
 0x692   : > { %v1151_v45 = vadd.f32 %v1150_v44, %v1149_v43 }
 0x694   : > { %v1111_v62 = vpop.f32.mrf.mxu3  ;;  %v1153_v47 = vadd.f32 %v1796_v1, %v1151_v45  ;;  %v1184_v1 = vmul.f32 %v1180_v21, %v2194_v8 }
 0x696   : > { %v1158_v17 = vadd.f32 %v2175_v23, %v1153_v47  ;;  %v1186_v14 = vadd.f32 1e-05, %v1184_v1  ;;  %v1501_v23 = vld [vmem:[%s173_s24 + $0x8] sm:$0xff]  ;;  %s1366_s24 = sshll.u32 (%p147_p0), %s2303_s14, 4  ;;  %s1367_s24 = int_to_ptr.hbm [resolvable:$true] %s1366_s24 }
 0x697   : > { %1245 = vmatpush.bf16.msra.mxu2 %v1501_v23 }
 0x698   : > { %v1162_v48 = vsel %vm226_vm1, %v1158_v17, 0.0  ;;  %1596 = vrsqrt.f32 %v1186_v14  ;;  %vm1194_vm6 = vweird.f32 %v1186_v14 }
 0x699   : > { %1163 = vadd.xlane.f32.xlu0 %v1162_v48 }
 0x69b   : > { %1246 = vmatpush.bf16.msra.mxu2 %v1500_v53 }
 0x69e   : > { %v1597_v52 = vpop.eup %1596 }
 0x69f   : > { %v1189_v54 = vmul.f32 %v1597_v52, %v1186_v14  ;;  %vm1195_vm5 = vweird.f32 %v1597_v52 }
 0x6a0   : > { %vm1196_vm7 = vmor %vm1194_vm6, %vm1195_vm5 }
 0x6a1   : > { %v1190_v55 = vmul.f32 %v1597_v52, %v1189_v54 }
 0x6a3   : > { %v1191_v57 = vmul.f32 0.5, %v1190_v55 }
 0x6a5   : > { %v1192_v60 = vsub.f32 1.5, %v1191_v57 }
 0x6a7   : > { %v1193_v63 = vmul.f32 %v1597_v52, %v1192_v60 }
 0x6a9   : > { %v1197_v9 = vsel %vm1196_vm7, %v1597_v52, %v1193_v63  ;;  %v1560_v63 = vld [vmem:[%s196_s20] ss:$0 sm:$0xff] }
 0x6aa   : > { %v1208_v18 = vmul.f32 %v1197_v9, %v2197_v51  ;;  %v1506_v51 = vld [vmem:[%s181_s6 + $0x18] sm:$0xff] }
 0x6ab   : > { %1291 = vmatpush.bf16.msra.mxu3 %v1506_v51 }
 0x6ac   : > { %v1213_v22 = vmul.f32 %v1556_v16, %v1208_v18 }
 0x6ae   : > { %v1218_v25 = vadd.f32 %v1557_v20, %v1213_v22 }
 0x6af   : > { %1292 = vmatpush.bf16.msra.mxu3 %v1505_v29 }
 0x6b3   : > { %1293 = vmatpush.bf16.msra.mxu3 %v1504_v30 }
 0x6b7   : > { %1294 = vmatpush.bf16.msra.mxu3 %v1503_v31 }
 0x70c   : > { %v1164_v46 = vpop.xlane.xlu0 %1163 }
 0x70d   : > { %v1173_v10 = vmul.f32 %v2194_v8, %v1164_v46 }
 0x70f   : > { %v1175_v11 = vsub.f32 %v1158_v17, %v1173_v10 }
 0x711   : > { %v1177_v49 = vmul.f32 %v1175_v11, %v1175_v11 }
 0x713   : > { %v1181_v50 = vsel %vm226_vm1, %v1177_v49, 0.0 }
 0x714   : > { %1182 = vadd.xlane.f32.xlu1 %v1181_v50 }
 0x787   : > { %v1183_v56 = vpop.xlane.xlu1 %1182 }
 0x788   : > { %v1185_v58 = vmul.f32 %v1183_v56, %v2194_v8 }
 0x78a   : > { %v1187_v59 = vadd.f32 1e-05, %v1185_v58 }
 0x78c   : > { %1598 = vrsqrt.f32 %v1187_v59  ;;  %vm1204_vm9 = vweird.f32 %v1187_v59 }
 0x792   : > { %v1599_v61 = vpop.eup %1598 }
 0x793   : > { %v1199_v3 = vmul.f32 %v1599_v61, %v1187_v59  ;;  %vm1205_vm8 = vweird.f32 %v1599_v61 }
 0x794   : > { %vm1206_vm10 = vmor %vm1204_vm9, %vm1205_vm8 }
 0x795   : > { %v1200_v6 = vmul.f32 %v1599_v61, %v1199_v3 }
 0x797   : > { %v1201_v13 = vmul.f32 0.5, %v1200_v6  ;;  %v1561_v6 = vld [vmem:[%s198_s21] ss:$0 sm:$0xff] }
 0x799   : > { %v1202_v15 = vsub.f32 1.5, %v1201_v13 }
 0x79b   : > { %v1203_v19 = vmul.f32 %v1599_v61, %v1202_v15 }
 0x79d   : > { %v1207_v12 = vsel %vm1206_vm10, %v1599_v61, %v1203_v19 }
 0x79e   : > { %v1209_v4 = vmul.f32 %v1207_v12, %v1175_v11 }
 0x7a0   : > { %v1214_v24 = vmul.f32 %v1556_v16, %v1209_v4 }
 0x7a2   : > { %v1219_v26 = vadd.f32 %v1557_v20, %v1214_v24 }
 0x7a4   : > { %v1220_v27 = vpack.c.bf16 %v1219_v26, %v1218_v25 }
 0x7a6   : > { %1475 = vmatmul.msk.bf16.vlgmr.msra.gmra.mxu2 %vm226_vm1, %v1220_v27 }
 0x829   : > { %v1248_v32 = vpop.f32.mrf.mxu2 }
 0x82a   : > { %v1249_v7 = vadd.f32 %v1558_v33, %v1248_v32 }
 0x82c   : > { %v1253_v35 = vmax.f32 %v1249_v7, 0.0 }
 0x831   : > { %v1250_v0 = vpop.f32.mrf.mxu2 }
 0x832   : > { %v1251_v34 = vadd.f32 %v1558_v33, %v1250_v0 }
 0x834   : > { %v1254_v5 = vmax.f32 %v1251_v34, 0.0 }
 0x836   : > { %v1255_v36 = vpack.c.bf16 %v1254_v5, %v1253_v35 }
 0x838   : > { %1492 = vmatmul.msk.bf16.vlgmr.msra.gmra.mxu3 %vm1283_vm11, %v1255_v36 }
 0x8bb   : > { %v1296_v38 = vpop.f32.mrf.mxu3 }
 0x8bc   : > { %v1297_v39 = vadd.f32 %v1559_v37, %v1296_v38 }
 0x8be   : > { %v1301_v28 = vadd.f32 %v1297_v39, %v1218_v25 }
 0x8c0   : > { %v1303_v40 = vsel %vm226_vm1, %v1301_v28, 0.0 }
 0x8c1   : > { %1304 = vadd.xlane.f32.xlu0 %v1303_v40 }
 0x8c3   : > { %v1298_v41 = vpop.f32.mrf.mxu3 }
 0x8c4   : > { %v1299_v42 = vadd.f32 %v1559_v37, %v1298_v41 }
 0x8c6   : > { %v1302_v43 = vadd.f32 %v1299_v42, %v1219_v26 }
 0x8c8   : > { %v1306_v44 = vsel %vm226_vm1, %v1302_v43, 0.0 }
 0x8c9   : > { %1307 = vadd.xlane.f32.xlu1 %v1306_v44 }
 0x934   : > { %v1305_v45 = vpop.xlane.xlu0 %1304 }
 0x935   : > { %v1309_v62 = vmul.f32 %v1305_v45, %v2194_v8 }
 0x937   : > { %v1311_v47 = vsub.f32 %v1301_v28, %v1309_v62 }
 0x939   : > { %v1313_v17 = vmul.f32 %v1311_v47, %v1311_v47 }
 0x93b   : > { %v1315_v48 = vsel %vm226_vm1, %v1313_v17, 0.0 }
 0x93c   : > { %v1308_v46 = vpop.xlane.xlu1 %1307  ;;  %1316 = vadd.xlane.f32.xlu2 %v1315_v48 }
 0x93d   : > { %v1310_v10 = vmul.f32 %v1308_v46, %v2194_v8 }
 0x93f   : > { %v1312_v11 = vsub.f32 %v1302_v43, %v1310_v10 }
 0x941   : > { %v1314_v49 = vmul.f32 %v1312_v11, %v1312_v11 }
 0x943   : > { %v1318_v50 = vsel %vm226_vm1, %v1314_v49, 0.0 }
 0x944   : > { %1319 = vadd.xlane.f32.xlu0 %v1318_v50 }
 0x9af   : > { %v1317_v21 = vpop.xlane.xlu2 %1316 }
 0x9b0   : > { %v1321_v1 = vmul.f32 %v1317_v21, %v2194_v8 }
 0x9b2   : > { %v1323_v14 = vadd.f32 1e-05, %v1321_v1 }
 0x9b4   : > { %1600 = vrsqrt.f32 %v1323_v14  ;;  %vm1331_vm13 = vweird.f32 %v1323_v14 }
 0x9b7   : > { %v1320_v23 = vpop.xlane.xlu0 %1319 }
 0x9b8   : > { %v1322_v52 = vmul.f32 %v1320_v23, %v2194_v8 }
 0x9ba   : > { %v1601_v53 = vpop.eup %1600  ;;  %v1324_v54 = vadd.f32 1e-05, %v1322_v52 }
 0x9bb   : > { %v1326_v55 = vmul.f32 %v1601_v53, %v1323_v14  ;;  %vm1332_vm12 = vweird.f32 %v1601_v53 }
 0x9bc   : > { %1602 = vrsqrt.f32 %v1324_v54  ;;  %vm1333_vm14 = vmor %vm1331_vm13, %vm1332_vm12  ;;  %vm1341_vm2 = vweird.f32 %v1324_v54 }
 0x9bd   : > { %v1327_v56 = vmul.f32 %v1601_v53, %v1326_v55 }
 0x9bf   : > { %v1328_v58 = vmul.f32 0.5, %v1327_v56 }
 0x9c1   : > { %v1329_v59 = vsub.f32 1.5, %v1328_v58 }
 0x9c2   : > { %v1603_v57 = vpop.eup %1602 }
 0x9c3   : > { %v1330_v60 = vmul.f32 %v1601_v53, %v1329_v59  ;;  %v1336_v61 = vmul.f32 %v1603_v57, %v1324_v54  ;;  %vm1342_vm15 = vweird.f32 %v1603_v57 }
 0x9c4   : > { %vm1343_vm3 = vmor %vm1341_vm2, %vm1342_vm15 }
 0x9c5   : > { %v1334_v8 = vsel %vm1333_vm14, %v1601_v53, %v1330_v60  ;;  %v1337_v3 = vmul.f32 %v1603_v57, %v1336_v61 }
 0x9c6   : > { %v1345_v9 = vmul.f32 %v1334_v8, %v1311_v47 }
 0x9c7   : > { %v1338_v13 = vmul.f32 0.5, %v1337_v3 }
 0x9c8   : > { %v1350_v15 = vmul.f32 %v1560_v63, %v1345_v9 }
 0x9c9   : > { %v1339_v16 = vsub.f32 1.5, %v1338_v13 }
 0x9ca   : > { %v1355_v18 = vadd.f32 %v1561_v6, %v1350_v15  }
 0x9cb   : > { %v1340_v19 = vmul.f32 %v1603_v57, %v1339_v16 }
 0x9cc   : > { %v2305_v0 = vmov %v1355_v18  ;;  %1358 = vst.msk [vmem:[#allocation13] sm:$0xff] (%p147_p0), %vm226_vm1, %v1355_v18 }
 0x9cd   : > { %v1344_v12 = vsel %vm1343_vm3, %v1603_v57, %v1340_v19 }
 0x9ce   : > { %v1346_v20 = vmul.f32 %v1344_v12, %v1312_v11 }
 0x9d0   : > { %v1351_v22 = vmul.f32 %v1560_v63, %v1346_v20  ;;  %149 = sbr.rel (!%p147_p0) target bundleno = 33 (0x21), region = 119 }
 0x9d2   : > { %v1356_v4 = vadd.f32 %v1561_v6, %v1351_v22  }
 0x9d4   : > { %v2304_v1 = vmov %v1356_v4  ;;  %1359 = vst.msk [vmem:[#allocation13 + $0x8] sm:$0xff] (%p147_p0), %vm226_vm1, %v1356_v4 }
 0x9d5   :  { %1372 = dma.vmem_to_hbm [thread:$0]  %s1365_s26, 256, %s1367_s24, [#allocation4], %s1811_s15, %s1811_s15, %s1812_s16  }
 0x9d6   :  { %1792 = dma.done.wait [#allocation4], 256  }
 0x9d7   :  { %1793 = vsyncadd [#allocation4], 4294967040 }
 0x9d8   :  { %1377 = vsyncpa [#allocation3], 1 }
 0x9d9   :  { %1378 = vsyncpa [#allocation6], 1 }
 0x9da   :  { %1379 = vsyncpa [#allocation9], 1 }
 0x9db   :  { %1380 = vsyncpa [#allocation12], 1 }
 0x9dc   :  { %1381 = vsyncpa [#allocation4], 1 }

</bundles_post_ra>
